<compile_context>
chip_gen: v6e
topology: v6e:2x2x1
jax: 0.10.0
libtpu: 0.0.40
codegen_flags: <defaults>
</compile_context>

<pallas_src>
import math

import jax
import jax.numpy as jnp
from jax import lax
from jax.experimental import pallas as pl
from jax.experimental.pallas import tpu as pltpu


def _round_up(x, m):
    return (x + m - 1) // m * m


BN_EPS = 1e-5


# ----------------------------------------------------------------------------
# Pallas kernel: fused (bf16 MXU matmul -> + per-channel bias -> activation)
# ----------------------------------------------------------------------------
def _make_fused_kernel(act):
    def kernel(p_ref, w_ref, b_ref, o_ref):
        # MXU: bf16 x bf16 -> f32 accumulate.
        y = jnp.dot(p_ref[...], w_ref[...], preferred_element_type=jnp.float32)
        y = y + b_ref[...]                        # folded BatchNorm shift
        if act == "lrelu":
            y = jnp.where(y > 0, y, 0.2 * y)      # LeakyReLU(0.2)
        elif act == "sigmoid":
            # divide goes to the EUP slot instead of VALU
            y = pl.reciprocal(1.0 + jnp.exp(-y), approx=True)
        o_ref[...] = y.astype(o_ref.dtype)
    return kernel


def fused_conv_matmul(patches, w_mat, shift, act, oc, out_dtype):
    """patches: (M, K) bf16 with K a multiple of 128 (padded in im2col),
    w_mat: (K, OCp) bf16 (OCp multiple of 128, BN scale already folded in),
    shift: (1, OCp) f32.  Returns (M, oc) in out_dtype."""
    M, K = patches.shape
    _, OCp = w_mat.shape

    # Large M tiles (up to 512 rows): fewer grid steps, less per-step overhead.
    tm = min(512, _round_up(M, 16))
    Mp = _round_up(M, tm)
    if Mp != M:                        # only the tiny tail layers need padding
        patches = jnp.pad(patches, ((0, Mp - M), (0, 0)))

    # Second parallel grid axis over output channels (lets v7x shard across
    # its 2 TensorCores for wide layers); degenerates to 1 step when OCp=128.
    tn = 256 if OCp % 256 == 0 else 128
    tn = min(tn, OCp)

    out = pl.pallas_call(
        _make_fused_kernel(act),
        out_shape=jax.ShapeDtypeStruct((Mp, OCp), out_dtype),
        grid_spec=pltpu.PrefetchScalarGridSpec(
            num_scalar_prefetch=0,
            grid=(Mp // tm, OCp // tn),
            in_specs=[
                pl.BlockSpec((tm, K), lambda i, j: (i, 0)),
                pl.BlockSpec((K, tn), lambda i, j: (0, j)),
                pl.BlockSpec((1, tn), lambda i, j: (0, j)),
            ],
            out_specs=pl.BlockSpec((tm, tn), lambda i, j: (i, j)),
        ),
        compiler_params=pltpu.CompilerParams(
            dimension_semantics=("parallel", "parallel"),
            vmem_limit_bytes=32 * 1024 * 1024),   # safe on v5e/v6e/v7x
    )(patches, w_mat, shift)
    return out[:M, :oc]


# ----------------------------------------------------------------------------
# Glue: im2col + weight reshaping (plain JAX)
# ----------------------------------------------------------------------------
def im2col(x_nhwc, kh, kw, stride, pad):
    """Returns patches (N*OH*OW, kh*kw*Cp); channels padded so the feature dim
    is already a multiple of 128 (no extra padded-copy downstream)."""
    N, H, W, C = x_nhwc.shape
    c_mult = 128 // math.gcd(kh * kw, 128)
    Cp = _round_up(C, c_mult)
    x = jnp.pad(x_nhwc, ((0, 0), (pad, pad), (pad, pad), (0, Cp - C)))
    Hp, Wp = H + 2 * pad, W + 2 * pad
    OH = (Hp - kh) // stride + 1
    OW = (Wp - kw) // stride + 1
    cols = []
    for i in range(kh):
        for j in range(kw):
            cols.append(x[:, i:i + stride * OH:stride,
                          j:j + stride * OW:stride, :])
    # patch feature ordering: (kh, kw, c)
    p = jnp.stack(cols, axis=3)                    # (N, OH, OW, KH*KW, Cp)
    return p.reshape(N * OH * OW, kh * kw * Cp), OH, OW, Cp


def torch_weight_to_matrix(w_oihw, scale, cp, ocp):
    """(OC, IC, KH, KW) f32 -> (KH*KW*cp, ocp) bf16 with BN scale folded in;
    row ordering (kh, kw, c) matches im2col."""
    OC, IC, KH, KW = w_oihw.shape
    w = w_oihw * scale[:, None, None, None]        # fold BN scale into weights
    w = jnp.transpose(w, (2, 3, 1, 0))             # (KH, KW, IC, OC)
    w = jnp.pad(w, ((0, 0), (0, 0), (0, cp - IC), (0, ocp - OC)))
    return w.reshape(KH * KW * cp, ocp).astype(jnp.bfloat16)


# ----------------------------------------------------------------------------
# Discriminator forward (Pallas path)
# ----------------------------------------------------------------------------
def discriminator_forward_pallas(x_nchw, params):
    # NCHW -> NHWC, bf16 inter-layer activations (halves HBM traffic).
    x = jnp.transpose(x_nchw, (0, 2, 3, 1)).astype(jnp.bfloat16)
    N = x.shape[0]
    n_layers = len(params)
    for li, layer in enumerate(params):
        w = layer["w"]                             # (OC, IC, KH, KW) f32
        OC, IC, KH, KW = w.shape
        stride, pad, act = layer["stride"], layer["pad"], layer["act"]
        if layer["bn"] is not None:
            gamma, beta, mean, var = layer["bn"]
            scale = gamma / jnp.sqrt(var + BN_EPS)
            shift = beta - mean * scale
        else:
            scale = jnp.ones((OC,), jnp.float32)
            shift = jnp.zeros((OC,), jnp.float32)
        patches, OH, OW, Cp = im2col(x, KH, KW, stride, pad)
        OCp = _round_up(OC, 128)
        w_mat = torch_weight_to_matrix(w, scale, Cp, OCp)
        shift_pad = jnp.zeros((1, OCp), jnp.float32).at[0, :OC].set(shift)
        out_dtype = jnp.float32 if li == n_layers - 1 else jnp.bfloat16
        out = fused_conv_matmul(patches, w_mat, shift_pad, act, OC, out_dtype)
        x = out.reshape(N, OH, OW, OC)
    return jnp.transpose(x, (0, 3, 1, 2))          # NHWC -> NCHW (f32)


# ----------------------------------------------------------------------------
# Pure-JAX f32 reference (for correctness check)
# ----------------------------------------------------------------------------
def discriminator_forward_ref(x_nchw, params):
    x = x_nchw
    for layer in params:
        x = lax.conv_general_dilated(
            x, layer["w"], (layer["stride"],) * 2,
            ((layer["pad"], layer["pad"]),) * 2,
            dimension_numbers=("NCHW", "OIHW", "NCHW"))
        if layer["bn"] is not None:
            gamma, beta, mean, var = layer["bn"]
            x = (x - mean[None, :, None, None]) / jnp.sqrt(
                var[None, :, None, None] + BN_EPS)
            x = x * gamma[None, :, None, None] + beta[None, :, None, None]
        if layer["act"] == "lrelu":
            x = jnp.where(x > 0, x, 0.2 * x)
        elif layer["act"] == "sigmoid":
            x = jax.nn.sigmoid(x)
    return x


# ----------------------------------------------------------------------------
# Deterministic parameter init (DCGAN-style), matching nn.Module shapes
# ----------------------------------------------------------------------------
def init_params(key, input_nc, ndf):
    specs = [
        # (in_c, out_c, stride, pad, has_bn, act)
        (input_nc, ndf,     2, 1, False, "lrelu"),
        (ndf,      ndf * 2, 2, 1, True,  "lrelu"),
        (ndf * 2,  ndf * 4, 2, 1, True,  "lrelu"),
        (ndf * 4,  ndf * 8, 2, 1, True,  "lrelu"),
        (ndf * 8,  1,       1, 0, False, "sigmoid"),
    ]
    params = []
    for (ic, oc, stride, pad, has_bn, act) in specs:
        key, kw, kg, kb, km, kv = jax.random.split(key, 6)
        w = 0.02 * jax.random.normal(kw, (oc, ic, 4, 4), jnp.float32)
        bn = None
        if has_bn:
            gamma = 1.0 + 0.1 * jax.random.normal(kg, (oc,), jnp.float32)
            beta = 0.1 * jax.random.normal(kb, (oc,), jnp.float32)
            mean = 0.1 * jax.random.normal(km, (oc,), jnp.float32)
            var = 0.8 + 0.4 * jnp.abs(jax.random.normal(kv, (oc,), jnp.float32))
            bn = (gamma, beta, mean, var)
        params.append({"w": w, "bn": bn, "stride": stride, "pad": pad,
                       "act": act})
    return params


if __name__ == "__main__":
    key = jax.random.PRNGKey(0)
    key, kx = jax.random.split(key)

    # Small DCGAN-D config; H=W=64 is the minimum spatial size for this
    # architecture (four stride-2 convs then a 4x4 valid conv -> 1x1 output).
    N, input_nc, ndf, H, W = 2, 3, 8, 64, 64
    x = jax.random.normal(kx, (N, input_nc, H, W), jnp.float32)
    params = init_params(key, input_nc, ndf)

    forward = jax.jit(lambda xx: discriminator_forward_pallas(xx, params))
    out = jax.block_until_ready(forward(x))
    assert out.shape == (N, 1, 1, 1), out.shape

    ref = discriminator_forward_ref(x, params)
    # bf16 MXU operands + bf16 inter-layer activations -> loosened tolerance.
    assert jnp.allclose(out, ref, rtol=5e-2, atol=5e-2), (
        "mismatch vs reference: max abs err "
        f"{float(jnp.max(jnp.abs(out - ref)))}")

    print("KERNEL_OK")
</pallas_src>

<mosaic_0001>
module attributes {stable_mosaic.version = 11 : i64} {
  func.func @kernel(%arg0: i32, %arg1: i32, %arg2: memref<512x128xbf16, #tpu.memory_space<vmem>>, %arg3: memref<128x128xbf16, #tpu.memory_space<vmem>>, %arg4: memref<1x128xf32, #tpu.memory_space<vmem>>, %arg5: memref<512x128xbf16, #tpu.memory_space<vmem>>) attributes {dimension_semantics = [#tpu.dimension_semantics<parallel>, #tpu.dimension_semantics<parallel>], iteration_bounds = array<i64: 4, 1>, scalar_prefetch = 0 : i64, scratch_operands = 0 : i64, tpu.core_type = #tpu.core_type<tc>, window_params = [{transform_indices = @transform_0, window_bounds = array<i64: 512, 128>}, {transform_indices = @transform_1, window_bounds = array<i64: 128, 128>}, {transform_indices = @transform_2, window_bounds = array<i64: 1, 128>}, {transform_indices = @transform_3, window_bounds = array<i64: 512, 128>}]} {
    %c0 = arith.constant 0 : index
    %c0_0 = arith.constant 0 : index
    %0 = vector.load %arg2[%c0, %c0_0] : memref<512x128xbf16, #tpu.memory_space<vmem>>, vector<512x128xbf16>
    %c0_1 = arith.constant 0 : index
    %c0_2 = arith.constant 0 : index
    %1 = vector.load %arg3[%c0_1, %c0_2] : memref<128x128xbf16, #tpu.memory_space<vmem>>, vector<128x128xbf16>
    %cst = arith.constant dense<0.000000e+00> : vector<512x128xf32>
    %2 = tpu.matmul %0, %1, %cst {dimension_numbers = #tpu.dot_dimension_numbers<[1], [0], [0], [1], [0, 0, 1, 1], [], []>} : vector<512x128xbf16>, vector<128x128xbf16>, vector<512x128xf32> -> vector<512x128xf32>
    %c0_3 = arith.constant 0 : index
    %c0_4 = arith.constant 0 : index
    %3 = vector.load %arg4[%c0_3, %c0_4] : memref<1x128xf32, #tpu.memory_space<vmem>>, vector<1x128xf32>
    %4 = vector.broadcast %3 : vector<1x128xf32> to vector<512x128xf32>
    %5 = arith.addf %2, %4 : vector<512x128xf32>
    %cst_5 = arith.constant 0.000000e+00 : f32
    %6 = vector.broadcast %cst_5 : f32 to vector<512x128xf32>
    %7 = arith.cmpf ogt, %5, %6 : vector<512x128xf32>
    %cst_6 = arith.constant 2.000000e-01 : f32
    %8 = vector.broadcast %cst_6 : f32 to vector<512x128xf32>
    %9 = arith.mulf %8, %5 : vector<512x128xf32>
    %10 = arith.select %7, %5, %9 : vector<512x128xi1>, vector<512x128xf32>
    %11 = arith.truncf %10 : vector<512x128xf32> to vector<512x128xbf16>
    %c0_7 = arith.constant 0 : index
    %c0_8 = arith.constant 0 : index
    %12 = vector.load %arg5[%c0_7, %c0_8] : memref<512x128xbf16, #tpu.memory_space<vmem>>, vector<512x128xbf16>
    tpu.vector_store %arg5[%c0_7, %c0_8], %11 {strides = array<i32>} : memref<512x128xbf16, #tpu.memory_space<vmem>>, vector<512x128xbf16>,
    return
  }
  func.func @transform_0(%arg0: i32, %arg1: i32) -> (i32, i32) {
    %c0_i32 = arith.constant 0 : i32
    %c0_i32_0 = arith.constant 0 : i32
    return %arg0, %c0_i32 : i32, i32
  }
  func.func @transform_1(%arg0: i32, %arg1: i32) -> (i32, i32) {
    %c0_i32 = arith.constant 0 : i32
    %c0_i32_0 = arith.constant 0 : i32
    return %c0_i32, %arg1 : i32, i32
  }
  func.func @transform_2(%arg0: i32, %arg1: i32) -> (i32, i32) {
    %c0_i32 = arith.constant 0 : i32
    %c0_i32_0 = arith.constant 0 : i32
    return %c0_i32, %arg1 : i32, i32
  }
  func.func @transform_3(%arg0: i32, %arg1: i32) -> (i32, i32) {
    %c0_i32 = arith.constant 0 : i32
    return %arg0, %arg1 : i32, i32
  }
}

module attributes {stable_mosaic.version = 11 : i64} {
  func.func @kernel(%arg0: i32, %arg1: i32, %arg2: memref<512x128xbf16, #tpu.memory_space<vmem>>, %arg3: memref<128x128xbf16, #tpu.memory_space<vmem>>, %arg4: memref<1x128xf32, #tpu.memory_space<vmem>>, %arg5: memref<512x128xbf16, #tpu.memory_space<vmem>>) attributes {dimension_semantics = [#tpu.dimension_semantics<parallel>, #tpu.dimension_semantics<parallel>], iteration_bounds = array<i64: 1, 1>, scalar_prefetch = 0 : i64, scratch_operands = 0 : i64, tpu.core_type = #tpu.core_type<tc>, window_params = [{transform_indices = @transform_0, window_bounds = array<i64: 512, 128>}, {transform_indices = @transform_1, window_bounds = array<i64: 128, 128>}, {transform_indices = @transform_2, window_bounds = array<i64: 1, 128>}, {transform_indices = @transform_3, window_bounds = array<i64: 512, 128>}]} {
    %c0 = arith.constant 0 : index
    %c0_0 = arith.constant 0 : index
    %0 = vector.load %arg2[%c0, %c0_0] : memref<512x128xbf16, #tpu.memory_space<vmem>>, vector<512x128xbf16>
    %c0_1 = arith.constant 0 : index
    %c0_2 = arith.constant 0 : index
    %1 = vector.load %arg3[%c0_1, %c0_2] : memref<128x128xbf16, #tpu.memory_space<vmem>>, vector<128x128xbf16>
    %cst = arith.constant dense<0.000000e+00> : vector<512x128xf32>
    %2 = tpu.matmul %0, %1, %cst {dimension_numbers = #tpu.dot_dimension_numbers<[1], [0], [0], [1], [0, 0, 1, 1], [], []>} : vector<512x128xbf16>, vector<128x128xbf16>, vector<512x128xf32> -> vector<512x128xf32>
    %c0_3 = arith.constant 0 : index
    %c0_4 = arith.constant 0 : index
    %3 = vector.load %arg4[%c0_3, %c0_4] : memref<1x128xf32, #tpu.memory_space<vmem>>, vector<1x128xf32>
    %4 = vector.broadcast %3 : vector<1x128xf32> to vector<512x128xf32>
    %5 = arith.addf %2, %4 : vector<512x128xf32>
    %cst_5 = arith.constant 0.000000e+00 : f32
    %6 = vector.broadcast %cst_5 : f32 to vector<512x128xf32>
    %7 = arith.cmpf ogt, %5, %6 : vector<512x128xf32>
    %cst_6 = arith.constant 2.000000e-01 : f32
    %8 = vector.broadcast %cst_6 : f32 to vector<512x128xf32>
    %9 = arith.mulf %8, %5 : vector<512x128xf32>
    %10 = arith.select %7, %5, %9 : vector<512x128xi1>, vector<512x128xf32>
    %11 = arith.truncf %10 : vector<512x128xf32> to vector<512x128xbf16>
    %c0_7 = arith.constant 0 : index
    %c0_8 = arith.constant 0 : index
    %12 = vector.load %arg5[%c0_7, %c0_8] : memref<512x128xbf16, #tpu.memory_space<vmem>>, vector<512x128xbf16>
    tpu.vector_store %arg5[%c0_7, %c0_8], %11 {strides = array<i32>} : memref<512x128xbf16, #tpu.memory_space<vmem>>, vector<512x128xbf16>,
    return
  }
  func.func @transform_0(%arg0: i32, %arg1: i32) -> (i32, i32) {
    %c0_i32 = arith.constant 0 : i32
    %c0_i32_0 = arith.constant 0 : i32
    return %arg0, %c0_i32 : i32, i32
  }
  func.func @transform_1(%arg0: i32, %arg1: i32) -> (i32, i32) {
    %c0_i32 = arith.constant 0 : i32
    %c0_i32_0 = arith.constant 0 : i32
    return %c0_i32, %arg1 : i32, i32
  }
  func.func @transform_2(%arg0: i32, %arg1: i32) -> (i32, i32) {
    %c0_i32 = arith.constant 0 : i32
    %c0_i32_0 = arith.constant 0 : i32
    return %c0_i32, %arg1 : i32, i32
  }
  func.func @transform_3(%arg0: i32, %arg1: i32) -> (i32, i32) {
    %c0_i32 = arith.constant 0 : i32
    return %arg0, %arg1 : i32, i32
  }
}

module attributes {stable_mosaic.version = 11 : i64} {
  func.func @kernel(%arg0: i32, %arg1: i32, %arg2: memref<128x256xbf16, #tpu.memory_space<vmem>>, %arg3: memref<256x128xbf16, #tpu.memory_space<vmem>>, %arg4: memref<1x128xf32, #tpu.memory_space<vmem>>, %arg5: memref<128x128xbf16, #tpu.memory_space<vmem>>) attributes {dimension_semantics = [#tpu.dimension_semantics<parallel>, #tpu.dimension_semantics<parallel>], iteration_bounds = array<i64: 1, 1>, scalar_prefetch = 0 : i64, scratch_operands = 0 : i64, tpu.core_type = #tpu.core_type<tc>, window_params = [{transform_indices = @transform_0, window_bounds = array<i64: 128, 256>}, {transform_indices = @transform_1, window_bounds = array<i64: 256, 128>}, {transform_indices = @transform_2, window_bounds = array<i64: 1, 128>}, {transform_indices = @transform_3, window_bounds = array<i64: 128, 128>}]} {
    %c0 = arith.constant 0 : index
    %c0_0 = arith.constant 0 : index
    %0 = vector.load %arg2[%c0, %c0_0] : memref<128x256xbf16, #tpu.memory_space<vmem>>, vector<128x256xbf16>
    %c0_1 = arith.constant 0 : index
    %c0_2 = arith.constant 0 : index
    %1 = vector.load %arg3[%c0_1, %c0_2] : memref<256x128xbf16, #tpu.memory_space<vmem>>, vector<256x128xbf16>
    %cst = arith.constant dense<0.000000e+00> : vector<128x128xf32>
    %2 = tpu.matmul %0, %1, %cst {dimension_numbers = #tpu.dot_dimension_numbers<[1], [0], [0], [1], [0, 0, 1, 1], [], []>} : vector<128x256xbf16>, vector<256x128xbf16>, vector<128x128xf32> -> vector<128x128xf32>
    %c0_3 = arith.constant 0 : index
    %c0_4 = arith.constant 0 : index
    %3 = vector.load %arg4[%c0_3, %c0_4] : memref<1x128xf32, #tpu.memory_space<vmem>>, vector<1x128xf32>
    %4 = vector.broadcast %3 : vector<1x128xf32> to vector<128x128xf32>
    %5 = arith.addf %2, %4 : vector<128x128xf32>
    %cst_5 = arith.constant 0.000000e+00 : f32
    %6 = vector.broadcast %cst_5 : f32 to vector<128x128xf32>
    %7 = arith.cmpf ogt, %5, %6 : vector<128x128xf32>
    %cst_6 = arith.constant 2.000000e-01 : f32
    %8 = vector.broadcast %cst_6 : f32 to vector<128x128xf32>
    %9 = arith.mulf %8, %5 : vector<128x128xf32>
    %10 = arith.select %7, %5, %9 : vector<128x128xi1>, vector<128x128xf32>
    %11 = arith.truncf %10 : vector<128x128xf32> to vector<128x128xbf16>
    %c0_7 = arith.constant 0 : index
    %c0_8 = arith.constant 0 : index
    %12 = vector.load %arg5[%c0_7, %c0_8] : memref<128x128xbf16, #tpu.memory_space<vmem>>, vector<128x128xbf16>
    tpu.vector_store %arg5[%c0_7, %c0_8], %11 {strides = array<i32>} : memref<128x128xbf16, #tpu.memory_space<vmem>>, vector<128x128xbf16>,
    return
  }
  func.func @transform_0(%arg0: i32, %arg1: i32) -> (i32, i32) {
    %c0_i32 = arith.constant 0 : i32
    %c0_i32_0 = arith.constant 0 : i32
    return %arg0, %c0_i32 : i32, i32
  }
  func.func @transform_1(%arg0: i32, %arg1: i32) -> (i32, i32) {
    %c0_i32 = arith.constant 0 : i32
    %c0_i32_0 = arith.constant 0 : i32
    return %c0_i32, %arg1 : i32, i32
  }
  func.func @transform_2(%arg0: i32, %arg1: i32) -> (i32, i32) {
    %c0_i32 = arith.constant 0 : i32
    %c0_i32_0 = arith.constant 0 : i32
    return %c0_i32, %arg1 : i32, i32
  }
  func.func @transform_3(%arg0: i32, %arg1: i32) -> (i32, i32) {
    %c0_i32 = arith.constant 0 : i32
    return %arg0, %arg1 : i32, i32
  }
}

module attributes {stable_mosaic.version = 11 : i64} {
  func.func @kernel(%arg0: i32, %arg1: i32, %arg2: memref<32x512xbf16, #tpu.memory_space<vmem>>, %arg3: memref<512x128xbf16, #tpu.memory_space<vmem>>, %arg4: memref<1x128xf32, #tpu.memory_space<vmem>>, %arg5: memref<32x128xbf16, #tpu.memory_space<vmem>>) attributes {dimension_semantics = [#tpu.dimension_semantics<parallel>, #tpu.dimension_semantics<parallel>], iteration_bounds = array<i64: 1, 1>, scalar_prefetch = 0 : i64, scratch_operands = 0 : i64, tpu.core_type = #tpu.core_type<tc>, window_params = [{transform_indices = @transform_0, window_bounds = array<i64: 32, 512>}, {transform_indices = @transform_1, window_bounds = array<i64: 512, 128>}, {transform_indices = @transform_2, window_bounds = array<i64: 1, 128>}, {transform_indices = @transform_3, window_bounds = array<i64: 32, 128>}]} {
    %c0 = arith.constant 0 : index
    %c0_0 = arith.constant 0 : index
    %0 = vector.load %arg2[%c0, %c0_0] : memref<32x512xbf16, #tpu.memory_space<vmem>>, vector<32x512xbf16>
    %c0_1 = arith.constant 0 : index
    %c0_2 = arith.constant 0 : index
    %1 = vector.load %arg3[%c0_1, %c0_2] : memref<512x128xbf16, #tpu.memory_space<vmem>>, vector<512x128xbf16>
    %cst = arith.constant dense<0.000000e+00> : vector<32x128xf32>
    %2 = tpu.matmul %0, %1, %cst {dimension_numbers = #tpu.dot_dimension_numbers<[1], [0], [0], [1], [0, 0, 1, 1], [], []>} : vector<32x512xbf16>, vector<512x128xbf16>, vector<32x128xf32> -> vector<32x128xf32>
    %c0_3 = arith.constant 0 : index
    %c0_4 = arith.constant 0 : index
    %3 = vector.load %arg4[%c0_3, %c0_4] : memref<1x128xf32, #tpu.memory_space<vmem>>, vector<1x128xf32>
    %4 = vector.broadcast %3 : vector<1x128xf32> to vector<32x128xf32>
    %5 = arith.addf %2, %4 : vector<32x128xf32>
    %cst_5 = arith.constant 0.000000e+00 : f32
    %6 = vector.broadcast %cst_5 : f32 to vector<32x128xf32>
    %7 = arith.cmpf ogt, %5, %6 : vector<32x128xf32>
    %cst_6 = arith.constant 2.000000e-01 : f32
    %8 = vector.broadcast %cst_6 : f32 to vector<32x128xf32>
    %9 = arith.mulf %8, %5 : vector<32x128xf32>
    %10 = arith.select %7, %5, %9 : vector<32x128xi1>, vector<32x128xf32>
    %11 = arith.truncf %10 : vector<32x128xf32> to vector<32x128xbf16>
    %c0_7 = arith.constant 0 : index
    %c0_8 = arith.constant 0 : index
    %12 = vector.load %arg5[%c0_7, %c0_8] : memref<32x128xbf16, #tpu.memory_space<vmem>>, vector<32x128xbf16>
    tpu.vector_store %arg5[%c0_7, %c0_8], %11 {strides = array<i32>} : memref<32x128xbf16, #tpu.memory_space<vmem>>, vector<32x128xbf16>,
    return
  }
  func.func @transform_0(%arg0: i32, %arg1: i32) -> (i32, i32) {
    %c0_i32 = arith.constant 0 : i32
    %c0_i32_0 = arith.constant 0 : i32
    return %arg0, %c0_i32 : i32, i32
  }
  func.func @transform_1(%arg0: i32, %arg1: i32) -> (i32, i32) {
    %c0_i32 = arith.constant 0 : i32
    %c0_i32_0 = arith.constant 0 : i32
    return %c0_i32, %arg1 : i32, i32
  }
  func.func @transform_2(%arg0: i32, %arg1: i32) -> (i32, i32) {
    %c0_i32 = arith.constant 0 : i32
    %c0_i32_0 = arith.constant 0 : i32
    return %c0_i32, %arg1 : i32, i32
  }
  func.func @transform_3(%arg0: i32, %arg1: i32) -> (i32, i32) {
    %c0_i32 = arith.constant 0 : i32
    return %arg0, %arg1 : i32, i32
  }
}

module attributes {stable_mosaic.version = 11 : i64} {
  func.func @kernel(%arg0: i32, %arg1: i32, %arg2: memref<16x1024xbf16, #tpu.memory_space<vmem>>, %arg3: memref<1024x128xbf16, #tpu.memory_space<vmem>>, %arg4: memref<1x128xf32, #tpu.memory_space<vmem>>, %arg5: memref<16x128xf32, #tpu.memory_space<vmem>>) attributes {dimension_semantics = [#tpu.dimension_semantics<parallel>, #tpu.dimension_semantics<parallel>], iteration_bounds = array<i64: 1, 1>, scalar_prefetch = 0 : i64, scratch_operands = 0 : i64, tpu.core_type = #tpu.core_type<tc>, window_params = [{transform_indices = @transform_0, window_bounds = array<i64: 16, 1024>}, {transform_indices = @transform_1, window_bounds = array<i64: 1024, 128>}, {transform_indices = @transform_2, window_bounds = array<i64: 1, 128>}, {transform_indices = @transform_3, window_bounds = array<i64: 16, 128>}]} {
    %c0 = arith.constant 0 : index
    %c0_0 = arith.constant 0 : index
    %0 = vector.load %arg2[%c0, %c0_0] : memref<16x1024xbf16, #tpu.memory_space<vmem>>, vector<16x1024xbf16>
    %c0_1 = arith.constant 0 : index
    %c0_2 = arith.constant 0 : index
    %1 = vector.load %arg3[%c0_1, %c0_2] : memref<1024x128xbf16, #tpu.memory_space<vmem>>, vector<1024x128xbf16>
    %cst = arith.constant dense<0.000000e+00> : vector<16x128xf32>
    %2 = tpu.matmul %0, %1, %cst {dimension_numbers = #tpu.dot_dimension_numbers<[1], [0], [0], [1], [0, 0, 1, 1], [], []>} : vector<16x1024xbf16>, vector<1024x128xbf16>, vector<16x128xf32> -> vector<16x128xf32>
    %c0_3 = arith.constant 0 : index
    %c0_4 = arith.constant 0 : index
    %3 = vector.load %arg4[%c0_3, %c0_4] : memref<1x128xf32, #tpu.memory_space<vmem>>, vector<1x128xf32>
    %4 = vector.broadcast %3 : vector<1x128xf32> to vector<16x128xf32>
    %5 = arith.addf %2, %4 : vector<16x128xf32>
    %cst_5 = arith.constant 0.000000e+00 : f32
    %6 = vector.broadcast %cst_5 : f32 to vector<16x128xf32>
    %7 = arith.subf %6, %5 : vector<16x128xf32>
    %8 = math.exp %7 : vector<16x128xf32>
    %cst_6 = arith.constant 1.000000e+00 : f32
    %9 = vector.broadcast %cst_6 : f32 to vector<16x128xf32>
    %10 = arith.addf %9, %8 : vector<16x128xf32>
    %11 = tpu.reciprocal %10 {approx = true} : vector<16x128xf32> -> vector<16x128xf32>
    %c0_7 = arith.constant 0 : index
    %c0_8 = arith.constant 0 : index
    %12 = vector.load %arg5[%c0_7, %c0_8] : memref<16x128xf32, #tpu.memory_space<vmem>>, vector<16x128xf32>
    tpu.vector_store %arg5[%c0_7, %c0_8], %11 {strides = array<i32>} : memref<16x128xf32, #tpu.memory_space<vmem>>, vector<16x128xf32>,
    return
  }
  func.func @transform_0(%arg0: i32, %arg1: i32) -> (i32, i32) {
    %c0_i32 = arith.constant 0 : i32
    %c0_i32_0 = arith.constant 0 : i32
    return %arg0, %c0_i32 : i32, i32
  }
  func.func @transform_1(%arg0: i32, %arg1: i32) -> (i32, i32) {
    %c0_i32 = arith.constant 0 : i32
    %c0_i32_0 = arith.constant 0 : i32
    return %c0_i32, %arg1 : i32, i32
  }
  func.func @transform_2(%arg0: i32, %arg1: i32) -> (i32, i32) {
    %c0_i32 = arith.constant 0 : i32
    %c0_i32_0 = arith.constant 0 : i32
    return %c0_i32, %arg1 : i32, i32
  }
  func.func @transform_3(%arg0: i32, %arg1: i32) -> (i32, i32) {
    %c0_i32 = arith.constant 0 : i32
    return %arg0, %arg1 : i32, i32
  }
}

</mosaic_0001>

<bundles_post_ra>
// kernel: _lambda_.5
= control target key start
LH: loop header
LB: loop body
LE: loop exit
PB: predicated region body
PF: predicated region fallthrough
CT: control target
= control target key end

     0   :  { %s2073_s12 = smov 0   ;;  %s2075_s13 = smov 0   ;;  %s2277_s0 = inlined_call_operand.vmem [shape: bf16[2048,128], index: 0, kind: input, shape index: {}]   ;;  %s2278_s1 = inlined_call_operand.vmem [shape: bf16[128,128], index: 1, kind: input, shape index: {}]   ;;  %s2279_s2 = inlined_call_operand.vmem [shape: f32[1,128], index: 2, kind: input, shape index: {}]   ;;  %s2280_s3 = inlined_call_operand.vmem [shape: bf16[2048,128], index: 3, kind: output, shape index: {}]  }
   0x1   :  { %s2077_s14 = smov 0  }
   0x2 LB: > { %s25_s15 = sadd.s32 1, %s2047_s13  ;;  %p1462_p0 = scmp.ge.s32.totalorder %s2051_s14, 1  ;;  %s2051_s14 = sphi %s2077_s14, %s13_s14   ;;  %s2047_s13 = sphi %s2075_s13, %s2282_s13   ;;  %s2043_s12 = sphi %s2073_s12, %s2281_s12  }
   0x3   : > { %p27_p1 = scmp.ge.s32.totalorder %s25_s15, 4  ;;  %p169_p2 = scmp.lt.s32.totalorder %s2051_s14, 5 }
   0x5   : > { %s2284_s15 = smov (%p27_p1, %s25_s15), 0  ;;  %p170_p3 = pnand %p1462_p0, %p169_p2 }
   0x6   : > { %s1463_s18 = sshll.u32 (!%p170_p3), %s2043_s12, 6 }
   0x7   : > { %173 = sbr.rel (%p170_p3) target bundleno = 315 (0x13b), region = 32  ;;  %p204_p4 = scmp.lt.s32.totalorder (!%p170_p3), %s1463_s18, 255 }
   0xc   : > { %v1989_v0 = vld [vmem:[%s2278_s1 + $0x38] sm:$0xff]   ;;  %v1990_v1 = vld [vmem:[%s2278_s1 + $0x30] sm:$0xff]   ;;  %s2286_s18 = smov (!%p204_p4, %s1463_s18), 255  ;;  %v1991_v2 = vld [vmem:[%s2278_s1 + $0x28] sm:$0xff]  }
   0xd   : > { %1869 = vmatprep.subr.bf16.mxu0 %v1989_v0  ;;  %1949 = vmatprep.subr.bf16.mxu1 %v1989_v0  ;;  %s1464_s23 = sshll.u32 %s2286_s18, 2  ;;  %v1992_v3 = vld [vmem:[%s2278_s1 + $0x20] sm:$0xff]   ;;  %v1993_v6 = vld [vmem:[%s2278_s1 + $0x18] sm:$0xff]   ;;  %v1994_v7 = vld [vmem:[%s2278_s1 + $0x10] sm:$0xff]  }
   0xe   : > { %1870 = vmatpush3.bf16.msra.mxu0 %v1989_v0  ;;  %1957 = vmatpush3.bf16.msra.mxu1 %v1989_v0  ;;  %s2108_s26 = scalar_lea.vmem %s2277_s0, %s1464_s23  ;;  %v1995_v8 = vld [vmem:[%s2278_s1 + $0x8] sm:$0xff]   ;;  %v1996_v9 = vld [vmem:[%s2278_s1] sm:$0xff]   ;;  %s2175_s17 = scalar_lea.vmem %s2280_s3, %s1464_s23 }
   0xf   : > { %1871 = vmatprep.subr.bf16.mxu0 %v1990_v1  ;;  %1950 = vmatprep.subr.bf16.mxu1 %v1990_v1  ;;  %v1997_v4 = vld [vmem:[%s2108_s26] sm:$0xff]   ;;  %v1999_v10 = vld [vmem:[%s2108_s26 + $0x8] sm:$0xff]   ;;  %v2001_v12 = vld [vmem:[%s2108_s26 + $0x10] sm:$0xff]  }
  0x10   : > { %v1998_v5 = vld [vmem:[%s2108_s26 + $0x80] sm:$0xff]   ;;  %1885 = vmatprep.mubr.bf16.mxu0 %v1997_v4  ;;  %v2000_v11 = vld [vmem:[%s2108_s26 + $0x88] sm:$0xff]   ;;  %v2002_v13 = vld [vmem:[%s2108_s26 + $0x90] sm:$0xff]  }
  0x11   : > { %1917 = vmatprep.mubr.bf16.mxu1 %v1998_v5  ;;  %v2003_v14 = vld [vmem:[%s2108_s26 + $0x18] sm:$0xff]   ;;  %v2005_v16 = vld [vmem:[%s2108_s26 + $0x20] sm:$0xff]   ;;  %v2007_v18 = vld [vmem:[%s2108_s26 + $0x28] sm:$0xff]  }
  0x12   : > { %1872 = vmatpush3.bf16.msra.mxu0 %v1990_v1  ;;  %1958 = vmatpush3.bf16.msra.mxu1 %v1990_v1  ;;  %v2004_v15 = vld [vmem:[%s2108_s26 + $0x98] sm:$0xff]   ;;  %v2006_v17 = vld [vmem:[%s2108_s26 + $0xa0] sm:$0xff]   ;;  %v2008_v19 = vld [vmem:[%s2108_s26 + $0xa8] sm:$0xff]  }
  0x13   : > { %1873 = vmatprep.subr.bf16.mxu0 %v1991_v2  ;;  %1951 = vmatprep.subr.bf16.mxu1 %v1991_v2  ;;  %v2009_v20 = vld [vmem:[%s2108_s26 + $0x30] sm:$0xff]   ;;  %v2011_v22 = vld [vmem:[%s2108_s26 + $0x38] sm:$0xff]   ;;  %v2013_v24 = vld [vmem:[%s2108_s26 + $0x40] sm:$0xff]  }
  0x14   : > { %v2010_v21 = vld [vmem:[%s2108_s26 + $0xb0] sm:$0xff]   ;;  %v2012_v23 = vld [vmem:[%s2108_s26 + $0xb8] sm:$0xff]   ;;  %v2014_v25 = vld [vmem:[%s2108_s26 + $0xc0] sm:$0xff]  }
  0x15   : > { %v2015_v26 = vld [vmem:[%s2108_s26 + $0x48] sm:$0xff]   ;;  %v2017_v28 = vld [vmem:[%s2108_s26 + $0x50] sm:$0xff]   ;;  %v2019_v30 = vld [vmem:[%s2108_s26 + $0x58] sm:$0xff]  }
  0x16   : > { %1874 = vmatpush3.bf16.msra.mxu0 %v1991_v2  ;;  %1959 = vmatpush3.bf16.msra.mxu1 %v1991_v2  ;;  %v2016_v27 = vld [vmem:[%s2108_s26 + $0xc8] sm:$0xff]   ;;  %v2018_v29 = vld [vmem:[%s2108_s26 + $0xd0] sm:$0xff]   ;;  %v2020_v31 = vld [vmem:[%s2108_s26 + $0xd8] sm:$0xff]  }
  0x17   : > { %1875 = vmatprep.subr.bf16.mxu0 %v1992_v3  ;;  %1952 = vmatprep.subr.bf16.mxu1 %v1992_v3  ;;  %v2021_v32 = vld [vmem:[%s2108_s26 + $0x60] sm:$0xff]   ;;  %v2023_v34 = vld [vmem:[%s2108_s26 + $0x68] sm:$0xff]   ;;  %v2025_v36 = vld [vmem:[%s2108_s26 + $0x70] sm:$0xff]  }
  0x18   : > { %v2022_v33 = vld [vmem:[%s2108_s26 + $0xe0] sm:$0xff]   ;;  %v2024_v35 = vld [vmem:[%s2108_s26 + $0xe8] sm:$0xff]   ;;  %v2026_v37 = vld [vmem:[%s2108_s26 + $0xf0] sm:$0xff]  }
  0x19   : > { %v2027_v38 = vld [vmem:[%s2108_s26 + $0x78] sm:$0xff]   ;;  %v2160_v40 = vld [vmem:[%s2279_s2] ss:$0 sm:$0xff] }
  0x1a   : > { %1876 = vmatpush3.bf16.msra.mxu0 %v1992_v3  ;;  %1960 = vmatpush3.bf16.msra.mxu1 %v1992_v3  ;;  %v2028_v39 = vld [vmem:[%s2108_s26 + $0xf8] sm:$0xff]  }
  0x1b   : > { %1877 = vmatprep.subr.bf16.mxu0 %v1993_v6  ;;  %1953 = vmatprep.subr.bf16.mxu1 %v1993_v6 }
  0x1e   : > { %1878 = vmatpush3.bf16.msra.mxu0 %v1993_v6  ;;  %1961 = vmatpush3.bf16.msra.mxu1 %v1993_v6 }
  0x1f   : > { %1879 = vmatprep.subr.bf16.mxu0 %v1994_v7  ;;  %1954 = vmatprep.subr.bf16.mxu1 %v1994_v7 }
  0x22   : > { %1880 = vmatpush3.bf16.msra.mxu0 %v1994_v7  ;;  %1962 = vmatpush3.bf16.msra.mxu1 %v1994_v7 }
  0x23   : > { %1881 = vmatprep.subr.bf16.mxu0 %v1995_v8  ;;  %1955 = vmatprep.subr.bf16.mxu1 %v1995_v8 }
  0x26   : > { %1882 = vmatpush3.bf16.msra.mxu0 %v1995_v8  ;;  %1963 = vmatpush3.bf16.msra.mxu1 %v1995_v8 }
  0x27   : > { %1883 = vmatprep.subr.bf16.mxu0 %v1996_v9  ;;  %1956 = vmatprep.subr.bf16.mxu1 %v1996_v9 }
  0x2a   : > { %1884 = vmatpush3.bf16.msra.mxu0 %v1996_v9  ;;  %1964 = vmatpush3.bf16.msra.mxu1 %v1996_v9 }
  0x2d   : > { %1886 = vmatmul.mubr.bf16.vlgmr.msra.gmra.mxu0 %v1999_v10  ;;  %1918 = vmatmul.mubr.bf16.vlgmr.msra.gmra.mxu1 %v2000_v11 }
  0x2e   : > { %1889 = vmatprep.mubr.bf16.mxu0 %v2001_v12  ;;  %1921 = vmatprep.mubr.bf16.mxu1 %v2002_v13 }
  0x35   : > { %1890 = vmatmul.mubr.bf16.gmra.mxu0 %v2003_v14  ;;  %1922 = vmatmul.mubr.bf16.gmra.mxu1 %v2004_v15 }
  0x36   : > { %1893 = vmatprep.mubr.bf16.mxu0 %v2005_v16  ;;  %1925 = vmatprep.mubr.bf16.mxu1 %v2006_v17 }
  0x3d   : > { %1894 = vmatmul.mubr.bf16.gmra.mxu0 %v2007_v18  ;;  %1926 = vmatmul.mubr.bf16.gmra.mxu1 %v2008_v19 }
  0x3e   : > { %1897 = vmatprep.mubr.bf16.mxu0 %v2009_v20  ;;  %1929 = vmatprep.mubr.bf16.mxu1 %v2010_v21 }
  0x45   : > { %1898 = vmatmul.mubr.bf16.gmra.mxu0 %v2011_v22  ;;  %1930 = vmatmul.mubr.bf16.gmra.mxu1 %v2012_v23 }
  0x46   : > { %1901 = vmatprep.mubr.bf16.mxu0 %v2013_v24  ;;  %1933 = vmatprep.mubr.bf16.mxu1 %v2014_v25 }
  0x4d   : > { %1902 = vmatmul.mubr.bf16.gmra.mxu0 %v2015_v26  ;;  %1934 = vmatmul.mubr.bf16.gmra.mxu1 %v2016_v27 }
  0x4e   : > { %1905 = vmatprep.mubr.bf16.mxu0 %v2017_v28  ;;  %1937 = vmatprep.mubr.bf16.mxu1 %v2018_v29 }
  0x55   : > { %1906 = vmatmul.mubr.bf16.gmra.mxu0 %v2019_v30  ;;  %1938 = vmatmul.mubr.bf16.gmra.mxu1 %v2020_v31 }
  0x56   : > { %1909 = vmatprep.mubr.bf16.mxu0 %v2021_v32  ;;  %1941 = vmatprep.mubr.bf16.mxu1 %v2022_v33 }
  0x5d   : > { %1910 = vmatmul.mubr.bf16.gmra.mxu0 %v2023_v34  ;;  %1942 = vmatmul.mubr.bf16.gmra.mxu1 %v2024_v35 }
  0x5e   : > { %1913 = vmatprep.mubr.bf16.mxu0 %v2025_v36  ;;  %1945 = vmatprep.mubr.bf16.mxu1 %v2026_v37 }
  0x65   : > { %1914 = vmatmul.mubr.bf16.gmra.mxu0 %v2027_v38  ;;  %1946 = vmatmul.mubr.bf16.gmra.mxu1 %v2028_v39 }
  0xed   : > { %v1887_v41 = vpop.f32.mrf.mxu0  ;;  %v1919_v42 = vpop.f32.mrf.mxu1 }
  0xee   : > { %v596_v43 = vadd.f32 %v1887_v41, %v2160_v40  ;;  %v724_v44 = vadd.f32 %v1919_v42, %v2160_v40 }
  0xef   : > { %v587_v45 = vpop.f32.mrf.mxu0  ;;  %v715_v46 = vpop.f32.mrf.mxu1 }
  0xf0   : > { %vm844_vm0 = vcmp.gt.f32.partialorder %v596_v43, 0.0  ;;  %v908_v47 = vmul.f32 0.2, %v596_v43  ;;  %vm876_vm1 = vcmp.gt.f32.partialorder %v724_v44, 0.0  ;;  %v940_v48 = vmul.f32 0.2, %v724_v44 }
  0xf1   : > { %v588_v49 = vadd.f32 %v2160_v40, %v587_v45  ;;  %v716_v50 = vadd.f32 %v2160_v40, %v715_v46  ;;  %v1888_v51 = vpop.f32.mrf.mxu0  ;;  %v1920_v52 = vpop.f32.mrf.mxu1 }
  0xf2   : > { %v972_v53 = vsel %vm844_vm0, %v596_v43, %v908_v47  ;;  %v599_v54 = vadd.f32 %v1888_v51, %v2160_v40  ;;  %v727_v55 = vadd.f32 %v1920_v52, %v2160_v40  ;;  %v1004_v56 = vsel %vm876_vm1, %v724_v44, %v940_v48 }
  0xf3   : > { %vm842_vm2 = vcmp.gt.f32.partialorder %v588_v49, 0.0  ;;  %v906_v57 = vmul.f32 0.2, %v588_v49  ;;  %vm874_vm3 = vcmp.gt.f32.partialorder %v716_v50, 0.0  ;;  %v590_v58 = vpop.f32.mrf.mxu0  ;;  %v718_v59 = vpop.f32.mrf.mxu1  ;;  %v938_v63 = vmul.f32 0.2, %v716_v50 }
  0xf4   : > { %vm845_vm4 = vcmp.gt.f32.partialorder %v599_v54, 0.0  ;;  %v909_v60 = vmul.f32 0.2, %v599_v54  ;;  %vm877_vm5 = vcmp.gt.f32.partialorder %v727_v55, 0.0  ;;  %v941_v61 = vmul.f32 0.2, %v727_v55 }
  0xf5   : > { %v970_v62 = vsel %vm842_vm2, %v588_v49, %v906_v57  ;;  %v591_v0 = vadd.f32 %v2160_v40, %v590_v58  ;;  %v719_v1 = vadd.f32 %v2160_v40, %v718_v59  ;;  %v1891_v2 = vpop.f32.mrf.mxu0  ;;  %v1923_v3 = vpop.f32.mrf.mxu1  ;;  %v1002_v15 = vsel %vm874_vm3, %v716_v50, %v938_v63 }
  0xf6   : > { %v973_v4 = vsel %vm845_vm4, %v599_v54, %v909_v60  ;;  %v1005_v5 = vsel %vm877_vm5, %v727_v55, %v941_v61  ;;  %v612_v6 = vadd.f32 %v1891_v2, %v2160_v40  ;;  %v740_v7 = vadd.f32 %v1923_v3, %v2160_v40 }
  0xf7   : > { %v1646_v8 = vpack.c.bf16 %v973_v4, %v972_v53  ;;  %v1726_v9 = vpack.c.bf16 %v1005_v5, %v1004_v56  ;;  %vm843_vm6 = vcmp.gt.f32.partialorder %v591_v0, 0.0  ;;  %v907_v10 = vmul.f32 0.2, %v591_v0  ;;  %v603_v11 = vpop.f32.mrf.mxu0  ;;  %v731_v12 = vpop.f32.mrf.mxu1 }
  0xf8   : > { %vm875_vm7 = vcmp.gt.f32.partialorder %v719_v1, 0.0  ;;  %v939_v13 = vmul.f32 0.2, %v719_v1  ;;  %vm848_vm8 = vcmp.gt.f32.partialorder %v612_v6, 0.0  ;;  %v912_v14 = vmul.f32 0.2, %v612_v6 }
  0xf9   : > { %1798 = vst [vmem:[%s2175_s17 + $0x8] sm:$0xff] %v1646_v8   ;;  %1814 = vst [vmem:[%s2175_s17 + $0x88] sm:$0xff] %v1726_v9   ;;  %v971_v16 = vsel %vm843_vm6, %v591_v0, %v907_v10  ;;  %v944_v17 = vmul.f32 0.2, %v740_v7  ;;  %v604_v18 = vadd.f32 %v2160_v40, %v603_v11  ;;  %v1892_v19 = vpop.f32.mrf.mxu0  ;;  %v1924_v20 = vpop.f32.mrf.mxu1  ;;  %vm880_vm9 = vcmp.gt.f32.partialorder %v740_v7, 0.0 }
  0xfa   : > { %v1641_v21 = vpack.c.bf16 %v971_v16, %v970_v62  ;;  %v1003_v22 = vsel %vm875_vm7, %v719_v1, %v939_v13  ;;  %v732_v23 = vadd.f32 %v2160_v40, %v731_v12  ;;  %v976_v25 = vsel %vm848_vm8, %v612_v6, %v912_v14 }
  0xfb   : > { %v1721_v24 = vpack.c.bf16 %v1003_v22, %v1002_v15  ;;  %vm846_vm10 = vcmp.gt.f32.partialorder %v604_v18, 0.0  ;;  %v910_v26 = vmul.f32 0.2, %v604_v18  ;;  %v606_v27 = vpop.f32.mrf.mxu0  ;;  %v734_v28 = vpop.f32.mrf.mxu1  ;;  %v615_v30 = vadd.f32 %v1892_v19, %v2160_v40 }
  0xfc   : > { %1642 = vst [vmem:[%s2175_s17] sm:$0xff] %v1641_v21   ;;  %vm878_vm11 = vcmp.gt.f32.partialorder %v732_v23, 0.0  ;;  %v942_v29 = vmul.f32 0.2, %v732_v23  ;;  %v743_v31 = vadd.f32 %v1924_v20, %v2160_v40  ;;  %v1008_v32 = vsel %vm880_vm9, %v740_v7, %v944_v17 }
  0xfd   : > { %1813 = vst [vmem:[%s2175_s17 + $0x80] sm:$0xff] %v1721_v24   ;;  %v974_v33 = vsel %vm846_vm10, %v604_v18, %v910_v26  ;;  %v607_v34 = vadd.f32 %v2160_v40, %v606_v27  ;;  %v735_v35 = vadd.f32 %v2160_v40, %v734_v28  ;;  %v1895_v36 = vpop.f32.mrf.mxu0  ;;  %v1927_v37 = vpop.f32.mrf.mxu1  ;;  %vm849_vm12 = vcmp.gt.f32.partialorder %v615_v30, 0.0 }
  0xfe   : > { %v1006_v38 = vsel %vm878_vm11, %v732_v23, %v942_v29  ;;  %v913_v39 = vmul.f32 0.2, %v615_v30  ;;  %vm881_vm13 = vcmp.gt.f32.partialorder %v743_v31, 0.0  ;;  %v945_v41 = vmul.f32 0.2, %v743_v31 }
  0xff   : > { %vm847_vm14 = vcmp.gt.f32.partialorder %v607_v34, 0.0  ;;  %v911_v42 = vmul.f32 0.2, %v607_v34  ;;  %vm879_vm15 = vcmp.gt.f32.partialorder %v735_v35, 0.0  ;;  %v619_v43 = vpop.f32.mrf.mxu0  ;;  %v747_v44 = vpop.f32.mrf.mxu1  ;;  %v943_v46 = vmul.f32 0.2, %v735_v35 }
 0x100   : > { %v977_v45 = vsel %vm849_vm12, %v615_v30, %v913_v39  ;;  %v628_v47 = vadd.f32 %v1895_v36, %v2160_v40  ;;  %v756_v48 = vadd.f32 %v1927_v37, %v2160_v40  ;;  %v1009_v50 = vsel %vm881_vm13, %v743_v31, %v945_v41 }
 0x101   : > { %v1656_v49 = vpack.c.bf16 %v977_v45, %v976_v25  ;;  %v975_v51 = vsel %vm847_vm14, %v607_v34, %v911_v42  ;;  %v620_v52 = vadd.f32 %v2160_v40, %v619_v43  ;;  %v1896_v53 = vpop.f32.mrf.mxu0  ;;  %v1928_v54 = vpop.f32.mrf.mxu1  ;;  %v1736_v55 = vpack.c.bf16 %v1009_v50, %v1008_v32 }
 0x102   : > { %v1651_v56 = vpack.c.bf16 %v975_v51, %v974_v33  ;;  %v1007_v57 = vsel %vm879_vm15, %v735_v35, %v943_v46  ;;  %vm852_vm0 = vcmp.gt.f32.partialorder %v628_v47, 0.0  ;;  %v916_v59 = vmul.f32 0.2, %v628_v47 }
 0x103   : > { %1800 = vst [vmem:[%s2175_s17 + $0x18] sm:$0xff] %v1656_v49   ;;  %v1731_v58 = vpack.c.bf16 %v1007_v57, %v1006_v38  ;;  %vm884_vm1 = vcmp.gt.f32.partialorder %v756_v48, 0.0  ;;  %v948_v60 = vmul.f32 0.2, %v756_v48  ;;  %v622_v61 = vpop.f32.mrf.mxu0  ;;  %v750_v62 = vpop.f32.mrf.mxu1  ;;  %1816 = vst [vmem:[%s2175_s17 + $0x98] sm:$0xff] %v1736_v55   ;;  %vm850_vm2 = vcmp.gt.f32.partialorder %v620_v52, 0.0 }
 0x104   : > { %1799 = vst [vmem:[%s2175_s17 + $0x10] sm:$0xff] %v1651_v56   ;;  %v914_v63 = vmul.f32 0.2, %v620_v52  ;;  %v748_v0 = vadd.f32 %v2160_v40, %v747_v44  ;;  %v631_v1 = vadd.f32 %v1896_v53, %v2160_v40  ;;  %v980_v2 = vsel %vm852_vm0, %v628_v47, %v916_v59 }
 0x105   : > { %1815 = vst [vmem:[%s2175_s17 + $0x90] sm:$0xff] %v1731_v58   ;;  %v1012_v3 = vsel %vm884_vm1, %v756_v48, %v948_v60  ;;  %v759_v4 = vadd.f32 %v1928_v54, %v2160_v40  ;;  %v623_v5 = vadd.f32 %v2160_v40, %v622_v61  ;;  %v1899_v6 = vpop.f32.mrf.mxu0  ;;  %v1931_v7 = vpop.f32.mrf.mxu1  ;;  %v751_v16 = vadd.f32 %v2160_v40, %v750_v62 }
 0x106   : > { %v978_v8 = vsel %vm850_vm2, %v620_v52, %v914_v63  ;;  %vm882_vm3 = vcmp.gt.f32.partialorder %v748_v0, 0.0  ;;  %v946_v9 = vmul.f32 0.2, %v748_v0  ;;  %vm853_vm4 = vcmp.gt.f32.partialorder %v631_v1, 0.0 }
 0x107   : > { %v917_v10 = vmul.f32 0.2, %v631_v1  ;;  %vm885_vm5 = vcmp.gt.f32.partialorder %v759_v4, 0.0  ;;  %v949_v11 = vmul.f32 0.2, %v759_v4  ;;  %vm851_vm6 = vcmp.gt.f32.partialorder %v623_v5, 0.0  ;;  %v635_v12 = vpop.f32.mrf.mxu0  ;;  %v763_v13 = vpop.f32.mrf.mxu1 }
 0x108   : > { %v1010_v14 = vsel %vm882_vm3, %v748_v0, %v946_v9  ;;  %v915_v15 = vmul.f32 0.2, %v623_v5  ;;  %v644_v17 = vadd.f32 %v1899_v6, %v2160_v40  ;;  %v772_v20 = vadd.f32 %v1931_v7, %v2160_v40 }
 0x109   : > { %v981_v18 = vsel %vm853_vm4, %v631_v1, %v917_v10  ;;  %v1013_v19 = vsel %vm885_vm5, %v759_v4, %v949_v11  ;;  %v636_v21 = vadd.f32 %v2160_v40, %v635_v12  ;;  %v1900_v22 = vpop.f32.mrf.mxu0  ;;  %v1932_v23 = vpop.f32.mrf.mxu1  ;;  %vm883_vm7 = vcmp.gt.f32.partialorder %v751_v16, 0.0 }
 0x10a   : > { %v1666_v24 = vpack.c.bf16 %v981_v18, %v980_v2  ;;  %v1746_v25 = vpack.c.bf16 %v1013_v19, %v1012_v3  ;;  %v979_v26 = vsel %vm851_vm6, %v623_v5, %v915_v15  ;;  %v947_v28 = vmul.f32 0.2, %v751_v16 }
 0x10b   : > { %v1661_v27 = vpack.c.bf16 %v979_v26, %v978_v8  ;;  %vm856_vm8 = vcmp.gt.f32.partialorder %v644_v17, 0.0  ;;  %v920_v29 = vmul.f32 0.2, %v644_v17  ;;  %v638_v30 = vpop.f32.mrf.mxu0  ;;  %v766_v31 = vpop.f32.mrf.mxu1  ;;  %vm888_vm9 = vcmp.gt.f32.partialorder %v772_v20, 0.0 }
 0x10c   : > { %1802 = vst [vmem:[%s2175_s17 + $0x28] sm:$0xff] %v1666_v24   ;;  %1818 = vst [vmem:[%s2175_s17 + $0xa8] sm:$0xff] %v1746_v25   ;;  %v952_v32 = vmul.f32 0.2, %v772_v20  ;;  %vm854_vm10 = vcmp.gt.f32.partialorder %v636_v21, 0.0  ;;  %v1011_v34 = vsel %vm883_vm7, %v751_v16, %v947_v28  ;;  %v764_v36 = vadd.f32 %v2160_v40, %v763_v13 }
 0x10d   : > { %v918_v33 = vmul.f32 0.2, %v636_v21  ;;  %1801 = vst [vmem:[%s2175_s17 + $0x20] sm:$0xff] %v1661_v27   ;;  %v984_v35 = vsel %vm856_vm8, %v644_v17, %v920_v29  ;;  %v647_v37 = vadd.f32 %v1900_v22, %v2160_v40  ;;  %v1903_v38 = vpop.f32.mrf.mxu0  ;;  %v1935_v39 = vpop.f32.mrf.mxu1  ;;  %v1741_v41 = vpack.c.bf16 %v1011_v34, %v1010_v14 }
 0x10e   : > { %v1016_v42 = vsel %vm888_vm9, %v772_v20, %v952_v32  ;;  %v775_v44 = vadd.f32 %v1932_v23, %v2160_v40  ;;  %vm886_vm11 = vcmp.gt.f32.partialorder %v764_v36, 0.0  ;;  %v950_v45 = vmul.f32 0.2, %v764_v36 }
 0x10f   : > { %v982_v43 = vsel %vm854_vm10, %v636_v21, %v918_v33  ;;  %vm857_vm12 = vcmp.gt.f32.partialorder %v647_v37, 0.0  ;;  %v921_v46 = vmul.f32 0.2, %v647_v37  ;;  %v651_v47 = vpop.f32.mrf.mxu0  ;;  %v779_v48 = vpop.f32.mrf.mxu1  ;;  %1817 = vst [vmem:[%s2175_s17 + $0xa0] sm:$0xff] %v1741_v41   ;;  %v639_v50 = vadd.f32 %v2160_v40, %v638_v30 }
 0x110   : > { %vm889_vm13 = vcmp.gt.f32.partialorder %v775_v44, 0.0  ;;  %v953_v49 = vmul.f32 0.2, %v775_v44  ;;  %v767_v51 = vadd.f32 %v2160_v40, %v766_v31  ;;  %v1014_v52 = vsel %vm886_vm11, %v764_v36, %v950_v45 }
 0x111   : > { %v985_v53 = vsel %vm857_vm12, %v647_v37, %v921_v46  ;;  %v660_v54 = vadd.f32 %v1903_v38, %v2160_v40  ;;  %v788_v55 = vadd.f32 %v1935_v39, %v2160_v40  ;;  %v1904_v56 = vpop.f32.mrf.mxu0  ;;  %v1936_v57 = vpop.f32.mrf.mxu1  ;;  %vm855_vm14 = vcmp.gt.f32.partialorder %v639_v50, 0.0 }
 0x112   : > { %v1676_v58 = vpack.c.bf16 %v985_v53, %v984_v35  ;;  %v1017_v59 = vsel %vm889_vm13, %v775_v44, %v953_v49  ;;  %v919_v60 = vmul.f32 0.2, %v639_v50  ;;  %vm887_vm15 = vcmp.gt.f32.partialorder %v767_v51, 0.0 }
 0x113   : > { %v1756_v61 = vpack.c.bf16 %v1017_v59, %v1016_v42  ;;  %v951_v62 = vmul.f32 0.2, %v767_v51  ;;  %vm860_vm0 = vcmp.gt.f32.partialorder %v660_v54, 0.0  ;;  %v654_v63 = vpop.f32.mrf.mxu0  ;;  %v782_v0 = vpop.f32.mrf.mxu1  ;;  %v924_v2 = vmul.f32 0.2, %v660_v54 }
 0x114   : > { %1804 = vst [vmem:[%s2175_s17 + $0x38] sm:$0xff] %v1676_v58   ;;  %v983_v1 = vsel %vm855_vm14, %v639_v50, %v919_v60  ;;  %vm892_vm1 = vcmp.gt.f32.partialorder %v788_v55, 0.0  ;;  %v956_v3 = vmul.f32 0.2, %v788_v55  ;;  %v652_v6 = vadd.f32 %v2160_v40, %v651_v47 }
 0x115   : > { %1820 = vst [vmem:[%s2175_s17 + $0xb8] sm:$0xff] %v1756_v61   ;;  %v1671_v4 = vpack.c.bf16 %v983_v1, %v982_v43  ;;  %v1015_v5 = vsel %vm887_vm15, %v767_v51, %v951_v62  ;;  %v780_v7 = vadd.f32 %v2160_v40, %v779_v48  ;;  %v1907_v8 = vpop.f32.mrf.mxu0  ;;  %v1939_v9 = vpop.f32.mrf.mxu1  ;;  %v988_v11 = vsel %vm860_vm0, %v660_v54, %v924_v2 }
 0x116   : > { %v1751_v10 = vpack.c.bf16 %v1015_v5, %v1014_v52  ;;  %v1020_v12 = vsel %vm892_vm1, %v788_v55, %v956_v3  ;;  %v663_v13 = vadd.f32 %v1904_v56, %v2160_v40  ;;  %vm858_vm2 = vcmp.gt.f32.partialorder %v652_v6, 0.0 }
 0x117   : > { %1803 = vst [vmem:[%s2175_s17 + $0x30] sm:$0xff] %v1671_v4   ;;  %v922_v14 = vmul.f32 0.2, %v652_v6  ;;  %vm890_vm3 = vcmp.gt.f32.partialorder %v780_v7, 0.0  ;;  %v954_v15 = vmul.f32 0.2, %v780_v7  ;;  %v667_v16 = vpop.f32.mrf.mxu0  ;;  %v795_v17 = vpop.f32.mrf.mxu1  ;;  %v791_v19 = vadd.f32 %v1936_v57, %v2160_v40 }
 0x118   : > { %1819 = vst [vmem:[%s2175_s17 + $0xb0] sm:$0xff] %v1751_v10   ;;  %vm861_vm4 = vcmp.gt.f32.partialorder %v663_v13, 0.0  ;;  %v925_v18 = vmul.f32 0.2, %v663_v13  ;;  %v655_v20 = vadd.f32 %v2160_v40, %v654_v63  ;;  %v783_v23 = vadd.f32 %v2160_v40, %v782_v0 }
 0x119   : > { %v986_v21 = vsel %vm858_vm2, %v652_v6, %v922_v14  ;;  %v1018_v22 = vsel %vm890_vm3, %v780_v7, %v954_v15  ;;  %v676_v24 = vadd.f32 %v1907_v8, %v2160_v40  ;;  %v1908_v25 = vpop.f32.mrf.mxu0  ;;  %v1940_v26 = vpop.f32.mrf.mxu1  ;;  %vm893_vm5 = vcmp.gt.f32.partialorder %v791_v19, 0.0 }
 0x11a   : > { %v989_v27 = vsel %vm861_vm4, %v663_v13, %v925_v18  ;;  %v957_v28 = vmul.f32 0.2, %v791_v19  ;;  %vm859_vm6 = vcmp.gt.f32.partialorder %v655_v20, 0.0  ;;  %v923_v30 = vmul.f32 0.2, %v655_v20 }
 0x11b   : > { %v1686_v29 = vpack.c.bf16 %v989_v27, %v988_v11  ;;  %vm891_vm7 = vcmp.gt.f32.partialorder %v783_v23, 0.0  ;;  %v955_v31 = vmul.f32 0.2, %v783_v23  ;;  %v670_v32 = vpop.f32.mrf.mxu0  ;;  %v798_v33 = vpop.f32.mrf.mxu1  ;;  %vm864_vm8 = vcmp.gt.f32.partialorder %v676_v24, 0.0 }
 0x11c   : > { %v1021_v34 = vsel %vm893_vm5, %v791_v19, %v957_v28  ;;  %v928_v35 = vmul.f32 0.2, %v676_v24  ;;  %v804_v36 = vadd.f32 %v1939_v9, %v2160_v40  ;;  %v987_v38 = vsel %vm859_vm6, %v655_v20, %v923_v30 }
 0x11d   : > { %1806 = vst [vmem:[%s2175_s17 + $0x48] sm:$0xff] %v1686_v29   ;;  %v1766_v37 = vpack.c.bf16 %v1021_v34, %v1020_v12  ;;  %v1019_v39 = vsel %vm891_vm7, %v783_v23, %v955_v31  ;;  %v668_v41 = vadd.f32 %v2160_v40, %v667_v16  ;;  %v1911_v42 = vpop.f32.mrf.mxu0  ;;  %v1943_v43 = vpop.f32.mrf.mxu1  ;;  %v1681_v44 = vpack.c.bf16 %v987_v38, %v986_v21 }
 0x11e   : > { %v1761_v45 = vpack.c.bf16 %v1019_v39, %v1018_v22  ;;  %v992_v46 = vsel %vm864_vm8, %v676_v24, %v928_v35  ;;  %vm896_vm9 = vcmp.gt.f32.partialorder %v804_v36, 0.0  ;;  %v960_v47 = vmul.f32 0.2, %v804_v36 }
 0x11f   : > { %1822 = vst [vmem:[%s2175_s17 + $0xc8] sm:$0xff] %v1766_v37   ;;  %vm862_vm10 = vcmp.gt.f32.partialorder %v668_v41, 0.0  ;;  %v926_v48 = vmul.f32 0.2, %v668_v41  ;;  %v796_v49 = vadd.f32 %v2160_v40, %v795_v17  ;;  %v683_v50 = vpop.f32.mrf.mxu0  ;;  %v811_v51 = vpop.f32.mrf.mxu1  ;;  %1805 = vst [vmem:[%s2175_s17 + $0x40] sm:$0xff] %v1681_v44   ;;  %v679_v52 = vadd.f32 %v1908_v25, %v2160_v40 }
 0x120   : > { %1821 = vst [vmem:[%s2175_s17 + $0xc0] sm:$0xff] %v1761_v45   ;;  %v807_v53 = vadd.f32 %v1940_v26, %v2160_v40  ;;  %v671_v54 = vadd.f32 %v2160_v40, %v670_v32  ;;  %v799_v55 = vadd.f32 %v2160_v40, %v798_v33  ;;  %v1024_v56 = vsel %vm896_vm9, %v804_v36, %v960_v47 }
 0x121   : > { %v990_v57 = vsel %vm862_vm10, %v668_v41, %v926_v48  ;;  %vm894_vm11 = vcmp.gt.f32.partialorder %v796_v49, 0.0  ;;  %v958_v58 = vmul.f32 0.2, %v796_v49  ;;  %v1912_v59 = vpop.f32.mrf.mxu0  ;;  %v1944_v60 = vpop.f32.mrf.mxu1  ;;  %vm865_vm12 = vcmp.gt.f32.partialorder %v679_v52, 0.0 }
 0x122   : > { %v929_v61 = vmul.f32 0.2, %v679_v52  ;;  %vm897_vm13 = vcmp.gt.f32.partialorder %v807_v53, 0.0  ;;  %v961_v62 = vmul.f32 0.2, %v807_v53  ;;  %vm863_vm14 = vcmp.gt.f32.partialorder %v671_v54, 0.0 }
 0x123   : > { %v1022_v63 = vsel %vm894_vm11, %v796_v49, %v958_v58  ;;  %v927_v0 = vmul.f32 0.2, %v671_v54  ;;  %vm895_vm15 = vcmp.gt.f32.partialorder %v799_v55, 0.0  ;;  %v686_v1 = vpop.f32.mrf.mxu0  ;;  %v814_v2 = vpop.f32.mrf.mxu1  ;;  %v959_v5 = vmul.f32 0.2, %v799_v55 }
 0x124   : > { %v993_v3 = vsel %vm865_vm12, %v679_v52, %v929_v61  ;;  %v1025_v4 = vsel %vm897_vm13, %v807_v53, %v961_v62  ;;  %v692_v6 = vadd.f32 %v1911_v42, %v2160_v40  ;;  %v820_v10 = vadd.f32 %v1943_v43, %v2160_v40 }
 0x125   : > { %v1696_v7 = vpack.c.bf16 %v993_v3, %v992_v46  ;;  %v1776_v8 = vpack.c.bf16 %v1025_v4, %v1024_v56  ;;  %v991_v9 = vsel %vm863_vm14, %v671_v54, %v927_v0  ;;  %v1915_v11 = vpop.f32.mrf.mxu0  ;;  %v1947_v12 = vpop.f32.mrf.mxu1  ;;  %v1023_v14 = vsel %vm895_vm15, %v799_v55, %v959_v5 }
 0x126   : > { %v1691_v13 = vpack.c.bf16 %v991_v9, %v990_v57  ;;  %vm868_vm0 = vcmp.gt.f32.partialorder %v692_v6, 0.0  ;;  %v932_v15 = vmul.f32 0.2, %v692_v6  ;;  %v1771_v16 = vpack.c.bf16 %v1023_v14, %v1022_v63 }
 0x127   : > { %1808 = vst [vmem:[%s2175_s17 + $0x58] sm:$0xff] %v1696_v7   ;;  %1824 = vst [vmem:[%s2175_s17 + $0xd8] sm:$0xff] %v1776_v8   ;;  %vm900_vm1 = vcmp.gt.f32.partialorder %v820_v10, 0.0  ;;  %v964_v17 = vmul.f32 0.2, %v820_v10  ;;  %v684_v18 = vadd.f32 %v2160_v40, %v683_v50  ;;  %v812_v19 = vadd.f32 %v2160_v40, %v811_v51  ;;  %v699_v25 = vpop.f32.mrf.mxu0  ;;  %v827_v26 = vpop.f32.mrf.mxu1 }
 0x128   : > { %1807 = vst [vmem:[%s2175_s17 + $0x50] sm:$0xff] %v1691_v13   ;;  %v695_v20 = vadd.f32 %v1912_v59, %v2160_v40  ;;  %v823_v21 = vadd.f32 %v1944_v60, %v2160_v40  ;;  %1823 = vst [vmem:[%s2175_s17 + $0xd0] sm:$0xff] %v1771_v16   ;;  %v996_v22 = vsel %vm868_vm0, %v692_v6, %v932_v15 }
 0x129   : > { %vm866_vm2 = vcmp.gt.f32.partialorder %v684_v18, 0.0  ;;  %v930_v23 = vmul.f32 0.2, %v684_v18  ;;  %v687_v24 = vadd.f32 %v2160_v40, %v686_v1  ;;  %v1028_v27 = vsel %vm900_vm1, %v820_v10, %v964_v17  ;;  %v1916_v39 = vpop.f32.mrf.mxu0  ;;  %v1948_v41 = vpop.f32.mrf.mxu1 }
 0x12a   : > { %vm898_vm3 = vcmp.gt.f32.partialorder %v812_v19, 0.0  ;;  %vm869_vm4 = vcmp.gt.f32.partialorder %v695_v20, 0.0  ;;  %v933_v28 = vmul.f32 0.2, %v695_v20  ;;  %v962_v29 = vmul.f32 0.2, %v812_v19 }
 0x12b   : > { %vm901_vm5 = vcmp.gt.f32.partialorder %v823_v21, 0.0  ;;  %v965_v30 = vmul.f32 0.2, %v823_v21  ;;  %vm867_vm6 = vcmp.gt.f32.partialorder %v687_v24, 0.0  ;;  %v994_v31 = vsel %vm866_vm2, %v684_v18, %v930_v23  ;;  %v702_v55 = vpop.f32.mrf.mxu0  ;;  %v830_v56 = vpop.f32.mrf.mxu1 }
 0x12c   : > { %v997_v32 = vsel %vm869_vm4, %v695_v20, %v933_v28  ;;  %v931_v33 = vmul.f32 0.2, %v687_v24  ;;  %v815_v34 = vadd.f32 %v2160_v40, %v814_v2  ;;  %v708_v37 = vadd.f32 %v1915_v11, %v2160_v40 }
 0x12d   : > { %v1706_v35 = vpack.c.bf16 %v997_v32, %v996_v22  ;;  %v1029_v36 = vsel %vm901_vm5, %v823_v21, %v965_v30  ;;  %v836_v38 = vadd.f32 %v1947_v12, %v2160_v40  ;;  %v1026_v45 = vsel %vm898_vm3, %v812_v19, %v962_v29 }
 0x12e   : > { %v1786_v42 = vpack.c.bf16 %v1029_v36, %v1028_v27  ;;  %v995_v43 = vsel %vm867_vm6, %v687_v24, %v931_v33  ;;  %vm899_vm7 = vcmp.gt.f32.partialorder %v815_v34, 0.0  ;;  %v963_v44 = vmul.f32 0.2, %v815_v34 }
 0x12f   : > { %1810 = vst [vmem:[%s2175_s17 + $0x68] sm:$0xff] %v1706_v35   ;;  %v1701_v46 = vpack.c.bf16 %v995_v43, %v994_v31  ;;  %vm872_vm8 = vcmp.gt.f32.partialorder %v708_v37, 0.0  ;;  %v936_v47 = vmul.f32 0.2, %v708_v37  ;;  %vm904_vm9 = vcmp.gt.f32.partialorder %v836_v38, 0.0 }
 0x130   : > { %1826 = vst [vmem:[%s2175_s17 + $0xe8] sm:$0xff] %v1786_v42   ;;  %v1027_v48 = vsel %vm899_vm7, %v815_v34, %v963_v44  ;;  %v968_v49 = vmul.f32 0.2, %v836_v38  ;;  %v700_v50 = vadd.f32 %v2160_v40, %v699_v25  ;;  %v828_v52 = vadd.f32 %v2160_v40, %v827_v26 }
 0x131   : > { %1809 = vst [vmem:[%s2175_s17 + $0x60] sm:$0xff] %v1701_v46   ;;  %v1781_v51 = vpack.c.bf16 %v1027_v48, %v1026_v45  ;;  %v711_v53 = vadd.f32 %v1916_v39, %v2160_v40  ;;  %v839_v54 = vadd.f32 %v1948_v41, %v2160_v40  ;;  %v1000_v57 = vsel %vm872_vm8, %v708_v37, %v936_v47 }
 0x132   : > { %v1032_v58 = vsel %vm904_vm9, %v836_v38, %v968_v49  ;;  %v934_v60 = vmul.f32 0.2, %v700_v50  ;;  %v703_v62 = vadd.f32 %v2160_v40, %v702_v55  ;;  %v831_v63 = vadd.f32 %v2160_v40, %v830_v56 }
 0x133   : > { %1825 = vst [vmem:[%s2175_s17 + $0xe0] sm:$0xff] %v1781_v51   ;;  %vm873_vm10 = vcmp.gt.f32.partialorder %v711_v53, 0.0  ;;  %v937_v59 = vmul.f32 0.2, %v711_v53  ;;  %vm905_vm11 = vcmp.gt.f32.partialorder %v839_v54, 0.0  ;;  %vm870_vm12 = vcmp.gt.f32.partialorder %v700_v50, 0.0 }
 0x134   : > { %v969_v61 = vmul.f32 0.2, %v839_v54  ;;  %vm902_vm13 = vcmp.gt.f32.partialorder %v828_v52, 0.0  ;;  %v966_v0 = vmul.f32 0.2, %v828_v52  ;;  %vm871_vm14 = vcmp.gt.f32.partialorder %v703_v62, 0.0 }
 0x135   : > { %v1001_v1 = vsel %vm873_vm10, %v711_v53, %v937_v59  ;;  %v935_v4 = vmul.f32 0.2, %v703_v62  ;;  %vm903_vm15 = vcmp.gt.f32.partialorder %v831_v63, 0.0  ;;  %v967_v6 = vmul.f32 0.2, %v831_v63 }
 0x136   : > { %v1716_v2 = vpack.c.bf16 %v1001_v1, %v1000_v57  ;;  %v1033_v3 = vsel %vm905_vm11, %v839_v54, %v969_v61  ;;  %v998_v7 = vsel %vm870_vm12, %v700_v50, %v934_v60  ;;  %v1030_v9 = vsel %vm902_vm13, %v828_v52, %v966_v0 }
 0x137   : > { %v1796_v5 = vpack.c.bf16 %v1033_v3, %v1032_v58  ;;  %v999_v8 = vsel %vm871_vm14, %v703_v62, %v935_v4  ;;  %v1031_v10 = vsel %vm903_vm15, %v831_v63, %v967_v6 }
 0x138   : > { %1812 = vst [vmem:[%s2175_s17 + $0x78] sm:$0xff] %v1716_v2   ;;  %v1711_v40 = vpack.c.bf16 %v999_v8, %v998_v7  ;;  %v1791_v11 = vpack.c.bf16 %v1031_v10, %v1030_v9 }
 0x139   : > { %1828 = vst [vmem:[%s2175_s17 + $0xf8] sm:$0xff] %v1796_v5  }
 0x13a   : > { %1811 = vst [vmem:[%s2175_s17 + $0x70] sm:$0xff] %v1711_v40   ;;  %1827 = vst [vmem:[%s2175_s17 + $0xf0] sm:$0xff] %v1791_v11  }
 0x13b PF: > { %s13_s14 = sadd.s32 1, %s2051_s14   ;;  %s2281_s12 = smov %s2047_s13 }
 0x13c   : > { %p10_p5 = scmp.ge.s32.totalorder %s13_s14, 6   ;;  %s2282_s13 = smov %s2284_s15 }
 0x13e   :  { %12 = sbr.rel (!%p10_p5) target bundleno = 2 (0x2), region = 68 }

// kernel: _lambda_.6
= control target key start
LH: loop header
LB: loop body
LE: loop exit
PB: predicated region body
PF: predicated region fallthrough
CT: control target
= control target key end

     0   :  { %s1991_s1 = inlined_call_operand.vmem [shape: bf16[128,128], index: 1, kind: input, shape index: {}]   ;;  %s1992_s0 = inlined_call_operand.vmem [shape: bf16[512,128], index: 0, kind: input, shape index: {}]   ;;  %s1993_s2 = inlined_call_operand.vmem [shape: f32[1,128], index: 2, kind: input, shape index: {}]   ;;  %s1994_s3 = inlined_call_operand.vmem [shape: bf16[512,128], index: 3, kind: output, shape index: {}]  }
   0x1   :  { %v1643_v0 = vld [vmem:[%s1991_s1 + $0x38] sm:$0xff]   ;;  %v1644_v1 = vld [vmem:[%s1991_s1 + $0x30] sm:$0xff]   ;;  %v1645_v2 = vld [vmem:[%s1991_s1 + $0x28] sm:$0xff]  }
   0x2   :  { %1547 = vmatprep.subr.bf16.mxu0 %v1643_v0  ;;  %1627 = vmatprep.subr.bf16.mxu1 %v1643_v0  ;;  %v1646_v3 = vld [vmem:[%s1991_s1 + $0x20] sm:$0xff]   ;;  %v1647_v6 = vld [vmem:[%s1991_s1 + $0x18] sm:$0xff]   ;;  %v1648_v7 = vld [vmem:[%s1991_s1 + $0x10] sm:$0xff]  }
   0x3   :  { %1548 = vmatpush3.bf16.msra.mxu0 %v1643_v0  ;;  %1635 = vmatpush3.bf16.msra.mxu1 %v1643_v0  ;;  %v1651_v4 = vld [vmem:[%s1992_s0] sm:$0xff]   ;;  %v1649_v8 = vld [vmem:[%s1991_s1 + $0x8] sm:$0xff]   ;;  %v1655_v12 = vld [vmem:[%s1992_s0 + $0x10] sm:$0xff]  }
   0x4   :  { %1549 = vmatprep.subr.bf16.mxu0 %v1644_v1  ;;  %1628 = vmatprep.subr.bf16.mxu1 %v1644_v1  ;;  %v1652_v5 = vld [vmem:[%s1992_s0 + $0x80] sm:$0xff]   ;;  %v1653_v10 = vld [vmem:[%s1992_s0 + $0x8] sm:$0xff]   ;;  %v1656_v13 = vld [vmem:[%s1992_s0 + $0x90] sm:$0xff]  }
   0x5   :  { %1563 = vmatprep.mubr.bf16.mxu0 %v1651_v4  ;;  %1595 = vmatprep.mubr.bf16.mxu1 %v1652_v5  ;;  %v1650_v9 = vld [vmem:[%s1991_s1] sm:$0xff]   ;;  %v1654_v11 = vld [vmem:[%s1992_s0 + $0x88] sm:$0xff]   ;;  %v1657_v14 = vld [vmem:[%s1992_s0 + $0x18] sm:$0xff]  }
   0x6   :  { %v1658_v15 = vld [vmem:[%s1992_s0 + $0x98] sm:$0xff]   ;;  %v1659_v16 = vld [vmem:[%s1992_s0 + $0x20] sm:$0xff]   ;;  %v1661_v18 = vld [vmem:[%s1992_s0 + $0x28] sm:$0xff]  }
   0x7   :  { %1550 = vmatpush3.bf16.msra.mxu0 %v1644_v1  ;;  %1636 = vmatpush3.bf16.msra.mxu1 %v1644_v1  ;;  %v1660_v17 = vld [vmem:[%s1992_s0 + $0xa0] sm:$0xff]   ;;  %v1662_v19 = vld [vmem:[%s1992_s0 + $0xa8] sm:$0xff]   ;;  %v1663_v20 = vld [vmem:[%s1992_s0 + $0x30] sm:$0xff]  }
   0x8   :  { %1551 = vmatprep.subr.bf16.mxu0 %v1645_v2  ;;  %1629 = vmatprep.subr.bf16.mxu1 %v1645_v2  ;;  %v1664_v21 = vld [vmem:[%s1992_s0 + $0xb0] sm:$0xff]   ;;  %v1665_v22 = vld [vmem:[%s1992_s0 + $0x38] sm:$0xff]   ;;  %v1667_v24 = vld [vmem:[%s1992_s0 + $0x40] sm:$0xff]  }
   0x9   :  { %v1666_v23 = vld [vmem:[%s1992_s0 + $0xb8] sm:$0xff]   ;;  %v1668_v25 = vld [vmem:[%s1992_s0 + $0xc0] sm:$0xff]   ;;  %v1669_v26 = vld [vmem:[%s1992_s0 + $0x48] sm:$0xff]  }
   0xa   :  { %v1670_v27 = vld [vmem:[%s1992_s0 + $0xc8] sm:$0xff]   ;;  %v1671_v28 = vld [vmem:[%s1992_s0 + $0x50] sm:$0xff]   ;;  %v1673_v30 = vld [vmem:[%s1992_s0 + $0x58] sm:$0xff]  }
   0xb   :  { %1552 = vmatpush3.bf16.msra.mxu0 %v1645_v2  ;;  %1637 = vmatpush3.bf16.msra.mxu1 %v1645_v2  ;;  %v1672_v29 = vld [vmem:[%s1992_s0 + $0xd0] sm:$0xff]   ;;  %v1674_v31 = vld [vmem:[%s1992_s0 + $0xd8] sm:$0xff]   ;;  %v1675_v32 = vld [vmem:[%s1992_s0 + $0x60] sm:$0xff]  }
   0xc   :  { %1553 = vmatprep.subr.bf16.mxu0 %v1646_v3  ;;  %1630 = vmatprep.subr.bf16.mxu1 %v1646_v3  ;;  %v1676_v33 = vld [vmem:[%s1992_s0 + $0xe0] sm:$0xff]   ;;  %v1677_v34 = vld [vmem:[%s1992_s0 + $0x68] sm:$0xff]   ;;  %v1679_v36 = vld [vmem:[%s1992_s0 + $0x70] sm:$0xff]  }
   0xd   :  { %v1678_v35 = vld [vmem:[%s1992_s0 + $0xe8] sm:$0xff]   ;;  %v1680_v37 = vld [vmem:[%s1992_s0 + $0xf0] sm:$0xff]   ;;  %v1681_v38 = vld [vmem:[%s1992_s0 + $0x78] sm:$0xff]  }
   0xe   :  { %v1682_v39 = vld [vmem:[%s1992_s0 + $0xf8] sm:$0xff]   ;;  %v1826_v40 = vld [vmem:[%s1993_s2] ss:$0 sm:$0xff] }
   0xf   :  { %1554 = vmatpush3.bf16.msra.mxu0 %v1646_v3  ;;  %1638 = vmatpush3.bf16.msra.mxu1 %v1646_v3 }
  0x10   :  { %1555 = vmatprep.subr.bf16.mxu0 %v1647_v6  ;;  %1631 = vmatprep.subr.bf16.mxu1 %v1647_v6 }
  0x13   :  { %1556 = vmatpush3.bf16.msra.mxu0 %v1647_v6  ;;  %1639 = vmatpush3.bf16.msra.mxu1 %v1647_v6 }
  0x14   :  { %1557 = vmatprep.subr.bf16.mxu0 %v1648_v7  ;;  %1632 = vmatprep.subr.bf16.mxu1 %v1648_v7 }
  0x17   :  { %1558 = vmatpush3.bf16.msra.mxu0 %v1648_v7  ;;  %1640 = vmatpush3.bf16.msra.mxu1 %v1648_v7 }
  0x18   :  { %1559 = vmatprep.subr.bf16.mxu0 %v1649_v8  ;;  %1633 = vmatprep.subr.bf16.mxu1 %v1649_v8 }
  0x1b   :  { %1560 = vmatpush3.bf16.msra.mxu0 %v1649_v8  ;;  %1641 = vmatpush3.bf16.msra.mxu1 %v1649_v8 }
  0x1c   :  { %1561 = vmatprep.subr.bf16.mxu0 %v1650_v9  ;;  %1634 = vmatprep.subr.bf16.mxu1 %v1650_v9 }
  0x1f   :  { %1562 = vmatpush3.bf16.msra.mxu0 %v1650_v9  ;;  %1642 = vmatpush3.bf16.msra.mxu1 %v1650_v9 }
  0x22   :  { %1564 = vmatmul.mubr.bf16.vlgmr.msra.gmra.mxu0 %v1653_v10  ;;  %1596 = vmatmul.mubr.bf16.vlgmr.msra.gmra.mxu1 %v1654_v11 }
  0x23   :  { %1567 = vmatprep.mubr.bf16.mxu0 %v1655_v12  ;;  %1599 = vmatprep.mubr.bf16.mxu1 %v1656_v13 }
  0x2a   :  { %1568 = vmatmul.mubr.bf16.gmra.mxu0 %v1657_v14  ;;  %1600 = vmatmul.mubr.bf16.gmra.mxu1 %v1658_v15 }
  0x2b   :  { %1571 = vmatprep.mubr.bf16.mxu0 %v1659_v16  ;;  %1603 = vmatprep.mubr.bf16.mxu1 %v1660_v17 }
  0x32   :  { %1572 = vmatmul.mubr.bf16.gmra.mxu0 %v1661_v18  ;;  %1604 = vmatmul.mubr.bf16.gmra.mxu1 %v1662_v19 }
  0x33   :  { %1575 = vmatprep.mubr.bf16.mxu0 %v1663_v20  ;;  %1607 = vmatprep.mubr.bf16.mxu1 %v1664_v21 }
  0x3a   :  { %1576 = vmatmul.mubr.bf16.gmra.mxu0 %v1665_v22  ;;  %1608 = vmatmul.mubr.bf16.gmra.mxu1 %v1666_v23 }
  0x3b   :  { %1579 = vmatprep.mubr.bf16.mxu0 %v1667_v24  ;;  %1611 = vmatprep.mubr.bf16.mxu1 %v1668_v25 }
  0x42   :  { %1580 = vmatmul.mubr.bf16.gmra.mxu0 %v1669_v26  ;;  %1612 = vmatmul.mubr.bf16.gmra.mxu1 %v1670_v27 }
  0x43   :  { %1583 = vmatprep.mubr.bf16.mxu0 %v1671_v28  ;;  %1615 = vmatprep.mubr.bf16.mxu1 %v1672_v29 }
  0x4a   :  { %1584 = vmatmul.mubr.bf16.gmra.mxu0 %v1673_v30  ;;  %1616 = vmatmul.mubr.bf16.gmra.mxu1 %v1674_v31 }
  0x4b   :  { %1587 = vmatprep.mubr.bf16.mxu0 %v1675_v32  ;;  %1619 = vmatprep.mubr.bf16.mxu1 %v1676_v33 }
  0x52   :  { %1588 = vmatmul.mubr.bf16.gmra.mxu0 %v1677_v34  ;;  %1620 = vmatmul.mubr.bf16.gmra.mxu1 %v1678_v35 }
  0x53   :  { %1591 = vmatprep.mubr.bf16.mxu0 %v1679_v36  ;;  %1623 = vmatprep.mubr.bf16.mxu1 %v1680_v37 }
  0x5a   :  { %1592 = vmatmul.mubr.bf16.gmra.mxu0 %v1681_v38  ;;  %1624 = vmatmul.mubr.bf16.gmra.mxu1 %v1682_v39 }
  0xe2   :  { %v1565_v41 = vpop.f32.mrf.mxu0  ;;  %v1597_v42 = vpop.f32.mrf.mxu1 }
  0xe3   :  { %v385_v43 = vadd.f32 %v1565_v41, %v1826_v40  ;;  %v513_v44 = vadd.f32 %v1597_v42, %v1826_v40 }
  0xe4   :  { %v376_v45 = vpop.f32.mrf.mxu0  ;;  %v504_v46 = vpop.f32.mrf.mxu1 }
  0xe5   :  { %vm633_vm0 = vcmp.gt.f32.partialorder %v385_v43, 0.0  ;;  %v697_v47 = vmul.f32 0.2, %v385_v43  ;;  %vm665_vm1 = vcmp.gt.f32.partialorder %v513_v44, 0.0  ;;  %v729_v48 = vmul.f32 0.2, %v513_v44 }
  0xe6   :  { %v377_v49 = vadd.f32 %v1826_v40, %v376_v45  ;;  %v505_v50 = vadd.f32 %v1826_v40, %v504_v46  ;;  %v1566_v51 = vpop.f32.mrf.mxu0  ;;  %v1598_v52 = vpop.f32.mrf.mxu1 }
  0xe7   :  { %v761_v53 = vsel %vm633_vm0, %v385_v43, %v697_v47  ;;  %v388_v54 = vadd.f32 %v1566_v51, %v1826_v40  ;;  %v516_v55 = vadd.f32 %v1598_v52, %v1826_v40  ;;  %v793_v56 = vsel %vm665_vm1, %v513_v44, %v729_v48 }
  0xe8   :  { %vm631_vm2 = vcmp.gt.f32.partialorder %v377_v49, 0.0  ;;  %v695_v57 = vmul.f32 0.2, %v377_v49  ;;  %vm663_vm3 = vcmp.gt.f32.partialorder %v505_v50, 0.0  ;;  %v379_v58 = vpop.f32.mrf.mxu0  ;;  %v507_v59 = vpop.f32.mrf.mxu1  ;;  %v727_v63 = vmul.f32 0.2, %v505_v50 }
  0xe9   :  { %vm634_vm4 = vcmp.gt.f32.partialorder %v388_v54, 0.0  ;;  %v698_v60 = vmul.f32 0.2, %v388_v54  ;;  %vm666_vm5 = vcmp.gt.f32.partialorder %v516_v55, 0.0  ;;  %v730_v61 = vmul.f32 0.2, %v516_v55 }
  0xea   :  { %v759_v62 = vsel %vm631_vm2, %v377_v49, %v695_v57  ;;  %v380_v0 = vadd.f32 %v1826_v40, %v379_v58  ;;  %v508_v1 = vadd.f32 %v1826_v40, %v507_v59  ;;  %v1569_v2 = vpop.f32.mrf.mxu0  ;;  %v1601_v3 = vpop.f32.mrf.mxu1  ;;  %v791_v15 = vsel %vm663_vm3, %v505_v50, %v727_v63 }
  0xeb   :  { %v762_v4 = vsel %vm634_vm4, %v388_v54, %v698_v60  ;;  %v794_v5 = vsel %vm666_vm5, %v516_v55, %v730_v61  ;;  %v401_v6 = vadd.f32 %v1569_v2, %v1826_v40  ;;  %v529_v7 = vadd.f32 %v1601_v3, %v1826_v40 }
  0xec   :  { %v1324_v8 = vpack.c.bf16 %v762_v4, %v761_v53  ;;  %v1404_v9 = vpack.c.bf16 %v794_v5, %v793_v56  ;;  %vm632_vm6 = vcmp.gt.f32.partialorder %v380_v0, 0.0  ;;  %v696_v10 = vmul.f32 0.2, %v380_v0  ;;  %v392_v11 = vpop.f32.mrf.mxu0  ;;  %v520_v12 = vpop.f32.mrf.mxu1 }
  0xed   :  { %vm664_vm7 = vcmp.gt.f32.partialorder %v508_v1, 0.0  ;;  %v728_v13 = vmul.f32 0.2, %v508_v1  ;;  %vm637_vm8 = vcmp.gt.f32.partialorder %v401_v6, 0.0  ;;  %v701_v14 = vmul.f32 0.2, %v401_v6 }
  0xee   :  { %1476 = vst [vmem:[%s1994_s3 + $0x8] sm:$0xff] %v1324_v8   ;;  %1492 = vst [vmem:[%s1994_s3 + $0x88] sm:$0xff] %v1404_v9   ;;  %v760_v16 = vsel %vm632_vm6, %v380_v0, %v696_v10  ;;  %v733_v17 = vmul.f32 0.2, %v529_v7  ;;  %v393_v18 = vadd.f32 %v1826_v40, %v392_v11  ;;  %v1570_v19 = vpop.f32.mrf.mxu0  ;;  %v1602_v20 = vpop.f32.mrf.mxu1  ;;  %vm669_vm9 = vcmp.gt.f32.partialorder %v529_v7, 0.0 }
  0xef   :  { %v1319_v21 = vpack.c.bf16 %v760_v16, %v759_v62  ;;  %v792_v22 = vsel %vm664_vm7, %v508_v1, %v728_v13  ;;  %v521_v23 = vadd.f32 %v1826_v40, %v520_v12  ;;  %v765_v25 = vsel %vm637_vm8, %v401_v6, %v701_v14 }
  0xf0   :  { %v1399_v24 = vpack.c.bf16 %v792_v22, %v791_v15  ;;  %vm635_vm10 = vcmp.gt.f32.partialorder %v393_v18, 0.0  ;;  %v699_v26 = vmul.f32 0.2, %v393_v18  ;;  %v395_v27 = vpop.f32.mrf.mxu0  ;;  %v523_v28 = vpop.f32.mrf.mxu1  ;;  %v404_v30 = vadd.f32 %v1570_v19, %v1826_v40 }
  0xf1   :  { %1320 = vst [vmem:[%s1994_s3] sm:$0xff] %v1319_v21   ;;  %vm667_vm11 = vcmp.gt.f32.partialorder %v521_v23, 0.0  ;;  %v731_v29 = vmul.f32 0.2, %v521_v23  ;;  %v532_v31 = vadd.f32 %v1602_v20, %v1826_v40  ;;  %v797_v32 = vsel %vm669_vm9, %v529_v7, %v733_v17 }
  0xf2   :  { %1491 = vst [vmem:[%s1994_s3 + $0x80] sm:$0xff] %v1399_v24   ;;  %v763_v33 = vsel %vm635_vm10, %v393_v18, %v699_v26  ;;  %v396_v34 = vadd.f32 %v1826_v40, %v395_v27  ;;  %v524_v35 = vadd.f32 %v1826_v40, %v523_v28  ;;  %v1573_v36 = vpop.f32.mrf.mxu0  ;;  %v1605_v37 = vpop.f32.mrf.mxu1  ;;  %vm638_vm12 = vcmp.gt.f32.partialorder %v404_v30, 0.0 }
  0xf3   :  { %v795_v38 = vsel %vm667_vm11, %v521_v23, %v731_v29  ;;  %v702_v39 = vmul.f32 0.2, %v404_v30  ;;  %vm670_vm13 = vcmp.gt.f32.partialorder %v532_v31, 0.0  ;;  %v734_v41 = vmul.f32 0.2, %v532_v31 }
  0xf4   :  { %vm636_vm14 = vcmp.gt.f32.partialorder %v396_v34, 0.0  ;;  %v700_v42 = vmul.f32 0.2, %v396_v34  ;;  %vm668_vm15 = vcmp.gt.f32.partialorder %v524_v35, 0.0  ;;  %v408_v43 = vpop.f32.mrf.mxu0  ;;  %v536_v44 = vpop.f32.mrf.mxu1  ;;  %v732_v46 = vmul.f32 0.2, %v524_v35 }
  0xf5   :  { %v766_v45 = vsel %vm638_vm12, %v404_v30, %v702_v39  ;;  %v417_v47 = vadd.f32 %v1573_v36, %v1826_v40  ;;  %v545_v48 = vadd.f32 %v1605_v37, %v1826_v40  ;;  %v798_v50 = vsel %vm670_vm13, %v532_v31, %v734_v41 }
  0xf6   :  { %v1334_v49 = vpack.c.bf16 %v766_v45, %v765_v25  ;;  %v764_v51 = vsel %vm636_vm14, %v396_v34, %v700_v42  ;;  %v409_v52 = vadd.f32 %v1826_v40, %v408_v43  ;;  %v1574_v53 = vpop.f32.mrf.mxu0  ;;  %v1606_v54 = vpop.f32.mrf.mxu1  ;;  %v1414_v55 = vpack.c.bf16 %v798_v50, %v797_v32 }
  0xf7   :  { %v1329_v56 = vpack.c.bf16 %v764_v51, %v763_v33  ;;  %v796_v57 = vsel %vm668_vm15, %v524_v35, %v732_v46  ;;  %vm641_vm0 = vcmp.gt.f32.partialorder %v417_v47, 0.0  ;;  %v705_v59 = vmul.f32 0.2, %v417_v47 }
  0xf8   :  { %1478 = vst [vmem:[%s1994_s3 + $0x18] sm:$0xff] %v1334_v49   ;;  %v1409_v58 = vpack.c.bf16 %v796_v57, %v795_v38  ;;  %vm673_vm1 = vcmp.gt.f32.partialorder %v545_v48, 0.0  ;;  %v737_v60 = vmul.f32 0.2, %v545_v48  ;;  %v411_v61 = vpop.f32.mrf.mxu0  ;;  %v539_v62 = vpop.f32.mrf.mxu1  ;;  %1494 = vst [vmem:[%s1994_s3 + $0x98] sm:$0xff] %v1414_v55   ;;  %vm639_vm2 = vcmp.gt.f32.partialorder %v409_v52, 0.0 }
  0xf9   :  { %1477 = vst [vmem:[%s1994_s3 + $0x10] sm:$0xff] %v1329_v56   ;;  %v703_v63 = vmul.f32 0.2, %v409_v52  ;;  %v537_v0 = vadd.f32 %v1826_v40, %v536_v44  ;;  %v420_v1 = vadd.f32 %v1574_v53, %v1826_v40  ;;  %v769_v2 = vsel %vm641_vm0, %v417_v47, %v705_v59 }
  0xfa   :  { %1493 = vst [vmem:[%s1994_s3 + $0x90] sm:$0xff] %v1409_v58   ;;  %v801_v3 = vsel %vm673_vm1, %v545_v48, %v737_v60  ;;  %v548_v4 = vadd.f32 %v1606_v54, %v1826_v40  ;;  %v412_v5 = vadd.f32 %v1826_v40, %v411_v61  ;;  %v1577_v6 = vpop.f32.mrf.mxu0  ;;  %v1609_v7 = vpop.f32.mrf.mxu1  ;;  %v540_v16 = vadd.f32 %v1826_v40, %v539_v62 }
  0xfb   :  { %v767_v8 = vsel %vm639_vm2, %v409_v52, %v703_v63  ;;  %vm671_vm3 = vcmp.gt.f32.partialorder %v537_v0, 0.0  ;;  %v735_v9 = vmul.f32 0.2, %v537_v0  ;;  %vm642_vm4 = vcmp.gt.f32.partialorder %v420_v1, 0.0 }
  0xfc   :  { %v706_v10 = vmul.f32 0.2, %v420_v1  ;;  %vm674_vm5 = vcmp.gt.f32.partialorder %v548_v4, 0.0  ;;  %v738_v11 = vmul.f32 0.2, %v548_v4  ;;  %vm640_vm6 = vcmp.gt.f32.partialorder %v412_v5, 0.0  ;;  %v424_v12 = vpop.f32.mrf.mxu0  ;;  %v552_v13 = vpop.f32.mrf.mxu1 }
  0xfd   :  { %v799_v14 = vsel %vm671_vm3, %v537_v0, %v735_v9  ;;  %v704_v15 = vmul.f32 0.2, %v412_v5  ;;  %v433_v17 = vadd.f32 %v1577_v6, %v1826_v40  ;;  %v561_v20 = vadd.f32 %v1609_v7, %v1826_v40 }
  0xfe   :  { %v770_v18 = vsel %vm642_vm4, %v420_v1, %v706_v10  ;;  %v802_v19 = vsel %vm674_vm5, %v548_v4, %v738_v11  ;;  %v425_v21 = vadd.f32 %v1826_v40, %v424_v12  ;;  %v1578_v22 = vpop.f32.mrf.mxu0  ;;  %v1610_v23 = vpop.f32.mrf.mxu1  ;;  %vm672_vm7 = vcmp.gt.f32.partialorder %v540_v16, 0.0 }
  0xff   :  { %v1344_v24 = vpack.c.bf16 %v770_v18, %v769_v2  ;;  %v1424_v25 = vpack.c.bf16 %v802_v19, %v801_v3  ;;  %v768_v26 = vsel %vm640_vm6, %v412_v5, %v704_v15  ;;  %v736_v28 = vmul.f32 0.2, %v540_v16 }
 0x100   :  { %v1339_v27 = vpack.c.bf16 %v768_v26, %v767_v8  ;;  %vm645_vm8 = vcmp.gt.f32.partialorder %v433_v17, 0.0  ;;  %v709_v29 = vmul.f32 0.2, %v433_v17  ;;  %v427_v30 = vpop.f32.mrf.mxu0  ;;  %v555_v31 = vpop.f32.mrf.mxu1  ;;  %vm677_vm9 = vcmp.gt.f32.partialorder %v561_v20, 0.0 }
 0x101   :  { %1480 = vst [vmem:[%s1994_s3 + $0x28] sm:$0xff] %v1344_v24   ;;  %1496 = vst [vmem:[%s1994_s3 + $0xa8] sm:$0xff] %v1424_v25   ;;  %v741_v32 = vmul.f32 0.2, %v561_v20  ;;  %vm643_vm10 = vcmp.gt.f32.partialorder %v425_v21, 0.0  ;;  %v800_v34 = vsel %vm672_vm7, %v540_v16, %v736_v28  ;;  %v553_v36 = vadd.f32 %v1826_v40, %v552_v13 }
 0x102   :  { %v707_v33 = vmul.f32 0.2, %v425_v21  ;;  %1479 = vst [vmem:[%s1994_s3 + $0x20] sm:$0xff] %v1339_v27   ;;  %v773_v35 = vsel %vm645_vm8, %v433_v17, %v709_v29  ;;  %v436_v37 = vadd.f32 %v1578_v22, %v1826_v40  ;;  %v1581_v38 = vpop.f32.mrf.mxu0  ;;  %v1613_v39 = vpop.f32.mrf.mxu1  ;;  %v1419_v41 = vpack.c.bf16 %v800_v34, %v799_v14 }
 0x103   :  { %v805_v42 = vsel %vm677_vm9, %v561_v20, %v741_v32  ;;  %v564_v44 = vadd.f32 %v1610_v23, %v1826_v40  ;;  %vm675_vm11 = vcmp.gt.f32.partialorder %v553_v36, 0.0  ;;  %v739_v45 = vmul.f32 0.2, %v553_v36 }
 0x104   :  { %v771_v43 = vsel %vm643_vm10, %v425_v21, %v707_v33  ;;  %vm646_vm12 = vcmp.gt.f32.partialorder %v436_v37, 0.0  ;;  %v710_v46 = vmul.f32 0.2, %v436_v37  ;;  %v440_v47 = vpop.f32.mrf.mxu0  ;;  %v568_v48 = vpop.f32.mrf.mxu1  ;;  %1495 = vst [vmem:[%s1994_s3 + $0xa0] sm:$0xff] %v1419_v41   ;;  %v428_v50 = vadd.f32 %v1826_v40, %v427_v30 }
 0x105   :  { %vm678_vm13 = vcmp.gt.f32.partialorder %v564_v44, 0.0  ;;  %v742_v49 = vmul.f32 0.2, %v564_v44  ;;  %v556_v51 = vadd.f32 %v1826_v40, %v555_v31  ;;  %v803_v52 = vsel %vm675_vm11, %v553_v36, %v739_v45 }
 0x106   :  { %v774_v53 = vsel %vm646_vm12, %v436_v37, %v710_v46  ;;  %v449_v54 = vadd.f32 %v1581_v38, %v1826_v40  ;;  %v577_v55 = vadd.f32 %v1613_v39, %v1826_v40  ;;  %v1582_v56 = vpop.f32.mrf.mxu0  ;;  %v1614_v57 = vpop.f32.mrf.mxu1  ;;  %vm644_vm14 = vcmp.gt.f32.partialorder %v428_v50, 0.0 }
 0x107   :  { %v1354_v58 = vpack.c.bf16 %v774_v53, %v773_v35  ;;  %v806_v59 = vsel %vm678_vm13, %v564_v44, %v742_v49  ;;  %v708_v60 = vmul.f32 0.2, %v428_v50  ;;  %vm676_vm15 = vcmp.gt.f32.partialorder %v556_v51, 0.0 }
 0x108   :  { %v1434_v61 = vpack.c.bf16 %v806_v59, %v805_v42  ;;  %v740_v62 = vmul.f32 0.2, %v556_v51  ;;  %vm649_vm0 = vcmp.gt.f32.partialorder %v449_v54, 0.0  ;;  %v443_v63 = vpop.f32.mrf.mxu0  ;;  %v571_v0 = vpop.f32.mrf.mxu1  ;;  %v713_v2 = vmul.f32 0.2, %v449_v54 }
 0x109   :  { %1482 = vst [vmem:[%s1994_s3 + $0x38] sm:$0xff] %v1354_v58   ;;  %v772_v1 = vsel %vm644_vm14, %v428_v50, %v708_v60  ;;  %vm681_vm1 = vcmp.gt.f32.partialorder %v577_v55, 0.0  ;;  %v745_v3 = vmul.f32 0.2, %v577_v55  ;;  %v441_v6 = vadd.f32 %v1826_v40, %v440_v47 }
 0x10a   :  { %1498 = vst [vmem:[%s1994_s3 + $0xb8] sm:$0xff] %v1434_v61   ;;  %v1349_v4 = vpack.c.bf16 %v772_v1, %v771_v43  ;;  %v804_v5 = vsel %vm676_vm15, %v556_v51, %v740_v62  ;;  %v569_v7 = vadd.f32 %v1826_v40, %v568_v48  ;;  %v1585_v8 = vpop.f32.mrf.mxu0  ;;  %v1617_v9 = vpop.f32.mrf.mxu1  ;;  %v777_v11 = vsel %vm649_vm0, %v449_v54, %v713_v2 }
 0x10b   :  { %v1429_v10 = vpack.c.bf16 %v804_v5, %v803_v52  ;;  %v809_v12 = vsel %vm681_vm1, %v577_v55, %v745_v3  ;;  %v452_v13 = vadd.f32 %v1582_v56, %v1826_v40  ;;  %vm647_vm2 = vcmp.gt.f32.partialorder %v441_v6, 0.0 }
 0x10c   :  { %1481 = vst [vmem:[%s1994_s3 + $0x30] sm:$0xff] %v1349_v4   ;;  %v711_v14 = vmul.f32 0.2, %v441_v6  ;;  %vm679_vm3 = vcmp.gt.f32.partialorder %v569_v7, 0.0  ;;  %v743_v15 = vmul.f32 0.2, %v569_v7  ;;  %v456_v16 = vpop.f32.mrf.mxu0  ;;  %v584_v17 = vpop.f32.mrf.mxu1  ;;  %v580_v19 = vadd.f32 %v1614_v57, %v1826_v40 }
 0x10d   :  { %1497 = vst [vmem:[%s1994_s3 + $0xb0] sm:$0xff] %v1429_v10   ;;  %vm650_vm4 = vcmp.gt.f32.partialorder %v452_v13, 0.0  ;;  %v714_v18 = vmul.f32 0.2, %v452_v13  ;;  %v444_v20 = vadd.f32 %v1826_v40, %v443_v63  ;;  %v572_v23 = vadd.f32 %v1826_v40, %v571_v0 }
 0x10e   :  { %v775_v21 = vsel %vm647_vm2, %v441_v6, %v711_v14  ;;  %v807_v22 = vsel %vm679_vm3, %v569_v7, %v743_v15  ;;  %v465_v24 = vadd.f32 %v1585_v8, %v1826_v40  ;;  %v1586_v25 = vpop.f32.mrf.mxu0  ;;  %v1618_v26 = vpop.f32.mrf.mxu1  ;;  %vm682_vm5 = vcmp.gt.f32.partialorder %v580_v19, 0.0 }
 0x10f   :  { %v778_v27 = vsel %vm650_vm4, %v452_v13, %v714_v18  ;;  %v746_v28 = vmul.f32 0.2, %v580_v19  ;;  %vm648_vm6 = vcmp.gt.f32.partialorder %v444_v20, 0.0  ;;  %v712_v30 = vmul.f32 0.2, %v444_v20 }
 0x110   :  { %v1364_v29 = vpack.c.bf16 %v778_v27, %v777_v11  ;;  %vm680_vm7 = vcmp.gt.f32.partialorder %v572_v23, 0.0  ;;  %v744_v31 = vmul.f32 0.2, %v572_v23  ;;  %v459_v32 = vpop.f32.mrf.mxu0  ;;  %v587_v33 = vpop.f32.mrf.mxu1  ;;  %vm653_vm8 = vcmp.gt.f32.partialorder %v465_v24, 0.0 }
 0x111   :  { %v810_v34 = vsel %vm682_vm5, %v580_v19, %v746_v28  ;;  %v717_v35 = vmul.f32 0.2, %v465_v24  ;;  %v593_v36 = vadd.f32 %v1617_v9, %v1826_v40  ;;  %v776_v38 = vsel %vm648_vm6, %v444_v20, %v712_v30 }
 0x112   :  { %1484 = vst [vmem:[%s1994_s3 + $0x48] sm:$0xff] %v1364_v29   ;;  %v1444_v37 = vpack.c.bf16 %v810_v34, %v809_v12  ;;  %v808_v39 = vsel %vm680_vm7, %v572_v23, %v744_v31  ;;  %v457_v41 = vadd.f32 %v1826_v40, %v456_v16  ;;  %v1589_v42 = vpop.f32.mrf.mxu0  ;;  %v1621_v43 = vpop.f32.mrf.mxu1  ;;  %v1359_v44 = vpack.c.bf16 %v776_v38, %v775_v21 }
 0x113   :  { %v1439_v45 = vpack.c.bf16 %v808_v39, %v807_v22  ;;  %v781_v46 = vsel %vm653_vm8, %v465_v24, %v717_v35  ;;  %vm685_vm9 = vcmp.gt.f32.partialorder %v593_v36, 0.0  ;;  %v749_v47 = vmul.f32 0.2, %v593_v36 }
 0x114   :  { %1500 = vst [vmem:[%s1994_s3 + $0xc8] sm:$0xff] %v1444_v37   ;;  %vm651_vm10 = vcmp.gt.f32.partialorder %v457_v41, 0.0  ;;  %v715_v48 = vmul.f32 0.2, %v457_v41  ;;  %v585_v49 = vadd.f32 %v1826_v40, %v584_v17  ;;  %v472_v50 = vpop.f32.mrf.mxu0  ;;  %v600_v51 = vpop.f32.mrf.mxu1  ;;  %1483 = vst [vmem:[%s1994_s3 + $0x40] sm:$0xff] %v1359_v44   ;;  %v468_v52 = vadd.f32 %v1586_v25, %v1826_v40 }
 0x115   :  { %1499 = vst [vmem:[%s1994_s3 + $0xc0] sm:$0xff] %v1439_v45   ;;  %v596_v53 = vadd.f32 %v1618_v26, %v1826_v40  ;;  %v460_v54 = vadd.f32 %v1826_v40, %v459_v32  ;;  %v588_v55 = vadd.f32 %v1826_v40, %v587_v33  ;;  %v813_v56 = vsel %vm685_vm9, %v593_v36, %v749_v47 }
 0x116   :  { %v779_v57 = vsel %vm651_vm10, %v457_v41, %v715_v48  ;;  %vm683_vm11 = vcmp.gt.f32.partialorder %v585_v49, 0.0  ;;  %v747_v58 = vmul.f32 0.2, %v585_v49  ;;  %v1590_v59 = vpop.f32.mrf.mxu0  ;;  %v1622_v60 = vpop.f32.mrf.mxu1  ;;  %vm654_vm12 = vcmp.gt.f32.partialorder %v468_v52, 0.0 }
 0x117   :  { %v718_v61 = vmul.f32 0.2, %v468_v52  ;;  %vm686_vm13 = vcmp.gt.f32.partialorder %v596_v53, 0.0  ;;  %v750_v62 = vmul.f32 0.2, %v596_v53  ;;  %vm652_vm14 = vcmp.gt.f32.partialorder %v460_v54, 0.0 }
 0x118   :  { %v811_v63 = vsel %vm683_vm11, %v585_v49, %v747_v58  ;;  %v716_v0 = vmul.f32 0.2, %v460_v54  ;;  %vm684_vm15 = vcmp.gt.f32.partialorder %v588_v55, 0.0  ;;  %v475_v1 = vpop.f32.mrf.mxu0  ;;  %v603_v2 = vpop.f32.mrf.mxu1  ;;  %v748_v5 = vmul.f32 0.2, %v588_v55 }
 0x119   :  { %v782_v3 = vsel %vm654_vm12, %v468_v52, %v718_v61  ;;  %v814_v4 = vsel %vm686_vm13, %v596_v53, %v750_v62  ;;  %v481_v6 = vadd.f32 %v1589_v42, %v1826_v40  ;;  %v609_v10 = vadd.f32 %v1621_v43, %v1826_v40 }
 0x11a   :  { %v1374_v7 = vpack.c.bf16 %v782_v3, %v781_v46  ;;  %v1454_v8 = vpack.c.bf16 %v814_v4, %v813_v56  ;;  %v780_v9 = vsel %vm652_vm14, %v460_v54, %v716_v0  ;;  %v1593_v11 = vpop.f32.mrf.mxu0  ;;  %v1625_v12 = vpop.f32.mrf.mxu1  ;;  %v812_v14 = vsel %vm684_vm15, %v588_v55, %v748_v5 }
 0x11b   :  { %v1369_v13 = vpack.c.bf16 %v780_v9, %v779_v57  ;;  %vm657_vm0 = vcmp.gt.f32.partialorder %v481_v6, 0.0  ;;  %v721_v15 = vmul.f32 0.2, %v481_v6  ;;  %v1449_v16 = vpack.c.bf16 %v812_v14, %v811_v63 }
 0x11c   :  { %1486 = vst [vmem:[%s1994_s3 + $0x58] sm:$0xff] %v1374_v7   ;;  %1502 = vst [vmem:[%s1994_s3 + $0xd8] sm:$0xff] %v1454_v8   ;;  %vm689_vm1 = vcmp.gt.f32.partialorder %v609_v10, 0.0  ;;  %v753_v17 = vmul.f32 0.2, %v609_v10  ;;  %v473_v18 = vadd.f32 %v1826_v40, %v472_v50  ;;  %v601_v19 = vadd.f32 %v1826_v40, %v600_v51  ;;  %v488_v25 = vpop.f32.mrf.mxu0  ;;  %v616_v26 = vpop.f32.mrf.mxu1 }
 0x11d   :  { %1485 = vst [vmem:[%s1994_s3 + $0x50] sm:$0xff] %v1369_v13   ;;  %v484_v20 = vadd.f32 %v1590_v59, %v1826_v40  ;;  %v612_v21 = vadd.f32 %v1622_v60, %v1826_v40  ;;  %1501 = vst [vmem:[%s1994_s3 + $0xd0] sm:$0xff] %v1449_v16   ;;  %v785_v22 = vsel %vm657_vm0, %v481_v6, %v721_v15 }
 0x11e   :  { %vm655_vm2 = vcmp.gt.f32.partialorder %v473_v18, 0.0  ;;  %v719_v23 = vmul.f32 0.2, %v473_v18  ;;  %v476_v24 = vadd.f32 %v1826_v40, %v475_v1  ;;  %v817_v27 = vsel %vm689_vm1, %v609_v10, %v753_v17  ;;  %v1594_v39 = vpop.f32.mrf.mxu0  ;;  %v1626_v41 = vpop.f32.mrf.mxu1 }
 0x11f   :  { %vm687_vm3 = vcmp.gt.f32.partialorder %v601_v19, 0.0  ;;  %vm658_vm4 = vcmp.gt.f32.partialorder %v484_v20, 0.0  ;;  %v722_v28 = vmul.f32 0.2, %v484_v20  ;;  %v751_v29 = vmul.f32 0.2, %v601_v19 }
 0x120   :  { %vm690_vm5 = vcmp.gt.f32.partialorder %v612_v21, 0.0  ;;  %v754_v30 = vmul.f32 0.2, %v612_v21  ;;  %vm656_vm6 = vcmp.gt.f32.partialorder %v476_v24, 0.0  ;;  %v783_v31 = vsel %vm655_vm2, %v473_v18, %v719_v23  ;;  %v491_v55 = vpop.f32.mrf.mxu0  ;;  %v619_v56 = vpop.f32.mrf.mxu1 }
 0x121   :  { %v786_v32 = vsel %vm658_vm4, %v484_v20, %v722_v28  ;;  %v720_v33 = vmul.f32 0.2, %v476_v24  ;;  %v604_v34 = vadd.f32 %v1826_v40, %v603_v2  ;;  %v497_v37 = vadd.f32 %v1593_v11, %v1826_v40 }
 0x122   :  { %v1384_v35 = vpack.c.bf16 %v786_v32, %v785_v22  ;;  %v818_v36 = vsel %vm690_vm5, %v612_v21, %v754_v30  ;;  %v625_v38 = vadd.f32 %v1625_v12, %v1826_v40  ;;  %v815_v45 = vsel %vm687_vm3, %v601_v19, %v751_v29 }
 0x123   :  { %v1464_v42 = vpack.c.bf16 %v818_v36, %v817_v27  ;;  %v784_v43 = vsel %vm656_vm6, %v476_v24, %v720_v33  ;;  %vm688_vm7 = vcmp.gt.f32.partialorder %v604_v34, 0.0  ;;  %v752_v44 = vmul.f32 0.2, %v604_v34 }
 0x124   :  { %1488 = vst [vmem:[%s1994_s3 + $0x68] sm:$0xff] %v1384_v35   ;;  %v1379_v46 = vpack.c.bf16 %v784_v43, %v783_v31  ;;  %vm661_vm8 = vcmp.gt.f32.partialorder %v497_v37, 0.0  ;;  %v725_v47 = vmul.f32 0.2, %v497_v37  ;;  %vm693_vm9 = vcmp.gt.f32.partialorder %v625_v38, 0.0 }
 0x125   :  { %1504 = vst [vmem:[%s1994_s3 + $0xe8] sm:$0xff] %v1464_v42   ;;  %v816_v48 = vsel %vm688_vm7, %v604_v34, %v752_v44  ;;  %v757_v49 = vmul.f32 0.2, %v625_v38  ;;  %v489_v50 = vadd.f32 %v1826_v40, %v488_v25  ;;  %v617_v52 = vadd.f32 %v1826_v40, %v616_v26 }
 0x126   :  { %1487 = vst [vmem:[%s1994_s3 + $0x60] sm:$0xff] %v1379_v46   ;;  %v1459_v51 = vpack.c.bf16 %v816_v48, %v815_v45  ;;  %v500_v53 = vadd.f32 %v1594_v39, %v1826_v40  ;;  %v628_v54 = vadd.f32 %v1626_v41, %v1826_v40  ;;  %v789_v57 = vsel %vm661_vm8, %v497_v37, %v725_v47 }
 0x127   :  { %v821_v58 = vsel %vm693_vm9, %v625_v38, %v757_v49  ;;  %v723_v60 = vmul.f32 0.2, %v489_v50  ;;  %v492_v62 = vadd.f32 %v1826_v40, %v491_v55  ;;  %v620_v63 = vadd.f32 %v1826_v40, %v619_v56 }
 0x128   :  { %1503 = vst [vmem:[%s1994_s3 + $0xe0] sm:$0xff] %v1459_v51   ;;  %vm662_vm10 = vcmp.gt.f32.partialorder %v500_v53, 0.0  ;;  %v726_v59 = vmul.f32 0.2, %v500_v53  ;;  %vm694_vm11 = vcmp.gt.f32.partialorder %v628_v54, 0.0  ;;  %vm659_vm12 = vcmp.gt.f32.partialorder %v489_v50, 0.0 }
 0x129   :  { %v758_v61 = vmul.f32 0.2, %v628_v54  ;;  %vm691_vm13 = vcmp.gt.f32.partialorder %v617_v52, 0.0  ;;  %v755_v0 = vmul.f32 0.2, %v617_v52  ;;  %vm660_vm14 = vcmp.gt.f32.partialorder %v492_v62, 0.0 }
 0x12a   :  { %v790_v1 = vsel %vm662_vm10, %v500_v53, %v726_v59  ;;  %v724_v4 = vmul.f32 0.2, %v492_v62  ;;  %vm692_vm15 = vcmp.gt.f32.partialorder %v620_v63, 0.0  ;;  %v756_v6 = vmul.f32 0.2, %v620_v63 }
 0x12b   :  { %v1394_v2 = vpack.c.bf16 %v790_v1, %v789_v57  ;;  %v822_v3 = vsel %vm694_vm11, %v628_v54, %v758_v61  ;;  %v787_v7 = vsel %vm659_vm12, %v489_v50, %v723_v60  ;;  %v819_v9 = vsel %vm691_vm13, %v617_v52, %v755_v0 }
 0x12c   :  { %v1474_v5 = vpack.c.bf16 %v822_v3, %v821_v58  ;;  %v788_v8 = vsel %vm660_vm14, %v492_v62, %v724_v4  ;;  %v820_v10 = vsel %vm692_vm15, %v620_v63, %v756_v6 }
 0x12d   :  { %1490 = vst [vmem:[%s1994_s3 + $0x78] sm:$0xff] %v1394_v2   ;;  %v1389_v40 = vpack.c.bf16 %v788_v8, %v787_v7  ;;  %v1469_v11 = vpack.c.bf16 %v820_v10, %v819_v9 }
 0x12e   :  { %1506 = vst [vmem:[%s1994_s3 + $0xf8] sm:$0xff] %v1474_v5  }
 0x12f   :  { %1489 = vst [vmem:[%s1994_s3 + $0x70] sm:$0xff] %v1389_v40   ;;  %1505 = vst [vmem:[%s1994_s3 + $0xf0] sm:$0xff] %v1469_v11  }

// kernel: _lambda_.7
= control target key start
LH: loop header
LB: loop body
LE: loop exit
PB: predicated region body
PF: predicated region fallthrough
CT: control target
= control target key end

     0   :  { %s868_s1 = inlined_call_operand.vmem [shape: bf16[256,128], index: 1, kind: input, shape index: {}]   ;;  %s869_s0 = inlined_call_operand.vmem [shape: bf16[128,256], index: 0, kind: input, shape index: {}]   ;;  %s870_s2 = inlined_call_operand.vmem [shape: f32[1,128], index: 2, kind: input, shape index: {}]   ;;  %s871_s3 = inlined_call_operand.vmem [shape: bf16[128,128], index: 3, kind: output, shape index: {}]  }
   0x1   :  { %v667_v0 = vld [vmem:[%s868_s1 + $0x78] sm:$0xff]   ;;  %v669_v2 = vld [vmem:[%s868_s1 + $0x70] sm:$0xff]   ;;  %v671_v4 = vld [vmem:[%s868_s1 + $0x68] sm:$0xff]  }
   0x2   :  { %v668_v1 = vld [vmem:[%s868_s1 + $0x38] sm:$0xff]   ;;  %587 = vmatprep.subr.bf16.mxu0 %v667_v0  ;;  %651 = vmatprep.subr.bf16.mxu1 %v667_v0  ;;  %v670_v3 = vld [vmem:[%s868_s1 + $0x30] sm:$0xff]   ;;  %v672_v5 = vld [vmem:[%s868_s1 + $0x28] sm:$0xff]  }
   0x3   :  { %588 = vmatpush3.bf16.msra.mxu0 %v668_v1  ;;  %659 = vmatpush3.bf16.msra.mxu1 %v668_v1  ;;  %v673_v6 = vld [vmem:[%s868_s1 + $0x60] sm:$0xff]   ;;  %v675_v8 = vld [vmem:[%s868_s1 + $0x58] sm:$0xff]   ;;  %v677_v10 = vld [vmem:[%s868_s1 + $0x50] sm:$0xff]  }
   0x4   :  { %589 = vmatprep.subr.bf16.mxu0 %v669_v2  ;;  %652 = vmatprep.subr.bf16.mxu1 %v669_v2  ;;  %v674_v7 = vld [vmem:[%s868_s1 + $0x20] sm:$0xff]   ;;  %v676_v9 = vld [vmem:[%s868_s1 + $0x18] sm:$0xff]   ;;  %v678_v13 = vld [vmem:[%s868_s1 + $0x10] sm:$0xff]  }
   0x5   :  { %v685_v11 = vld [vmem:[%s869_s0 + $0x4] ss:$8 sps:$4 sm:$0xff]   ;;  %v683_v18 = vld [vmem:[%s869_s0] ss:$8 sps:$4 sm:$0xff]   ;;  %v689_v20 = vld [vmem:[%s869_s0 + $0x14] ss:$8 sps:$4 sm:$0xff]  }
   0x6   :  { %v688_v12 = vld [vmem:[%s869_s0 + $0x44] ss:$8 sps:$4 sm:$0xff]   ;;  %278 = vmatprep.mubr.bf16.mxu0 %v685_v11  ;;  %v686_v19 = vld [vmem:[%s869_s0 + $0x40] ss:$8 sps:$4 sm:$0xff]   ;;  %v691_v21 = vld [vmem:[%s869_s0 + $0x54] ss:$8 sps:$4 sm:$0xff]  }
   0x7   :  { %590 = vmatpush3.bf16.msra.mxu0 %v670_v3  ;;  %660 = vmatpush3.bf16.msra.mxu1 %v670_v3  ;;  %v679_v14 = vld [vmem:[%s868_s1 + $0x48] sm:$0xff]   ;;  %v681_v16 = vld [vmem:[%s868_s1 + $0x40] sm:$0xff]   ;;  %v693_v22 = vld [vmem:[%s869_s0 + $0x10] ss:$8 sps:$4 sm:$0xff]  }
   0x8   :  { %591 = vmatprep.subr.bf16.mxu0 %v671_v4  ;;  %653 = vmatprep.subr.bf16.mxu1 %v671_v4  ;;  %v680_v15 = vld [vmem:[%s868_s1 + $0x8] sm:$0xff]   ;;  %v682_v17 = vld [vmem:[%s868_s1] sm:$0xff]   ;;  %v694_v23 = vld [vmem:[%s869_s0 + $0x50] ss:$8 sps:$4 sm:$0xff]  }
   0x9   :  { %310 = vmatprep.mubr.bf16.mxu1 %v688_v12  ;;  %v695_v24 = vld [vmem:[%s869_s0 + $0x24] ss:$8 sps:$4 sm:$0xff]   ;;  %v699_v26 = vld [vmem:[%s869_s0 + $0x20] ss:$8 sps:$4 sm:$0xff]   ;;  %v701_v28 = vld [vmem:[%s869_s0 + $0x34] ss:$8 sps:$4 sm:$0xff]  }
   0xa   :  { %v697_v25 = vld [vmem:[%s869_s0 + $0x64] ss:$8 sps:$4 sm:$0xff]   ;;  %v700_v27 = vld [vmem:[%s869_s0 + $0x60] ss:$8 sps:$4 sm:$0xff]   ;;  %v703_v29 = vld [vmem:[%s869_s0 + $0x74] ss:$8 sps:$4 sm:$0xff]  }
   0xb   :  { %592 = vmatpush3.bf16.msra.mxu0 %v672_v5  ;;  %661 = vmatpush3.bf16.msra.mxu1 %v672_v5  ;;  %v705_v30 = vld [vmem:[%s869_s0 + $0x30] ss:$8 sps:$4 sm:$0xff]   ;;  %v826_v34 = vld [vmem:[%s870_s2] ss:$0 sm:$0xff] }
   0xc   :  { %593 = vmatprep.subr.bf16.mxu0 %v673_v6  ;;  %654 = vmatprep.subr.bf16.mxu1 %v673_v6  ;;  %v706_v31 = vld [vmem:[%s869_s0 + $0x70] ss:$8 sps:$4 sm:$0xff]  }
   0xf   :  { %594 = vmatpush3.bf16.msra.mxu0 %v674_v7  ;;  %662 = vmatpush3.bf16.msra.mxu1 %v674_v7 }
  0x10   :  { %595 = vmatprep.subr.bf16.mxu0 %v675_v8  ;;  %655 = vmatprep.subr.bf16.mxu1 %v675_v8 }
  0x13   :  { %596 = vmatpush3.bf16.msra.mxu0 %v676_v9  ;;  %663 = vmatpush3.bf16.msra.mxu1 %v676_v9 }
  0x14   :  { %597 = vmatprep.subr.bf16.mxu0 %v677_v10  ;;  %656 = vmatprep.subr.bf16.mxu1 %v677_v10 }
  0x17   :  { %598 = vmatpush3.bf16.msra.mxu0 %v678_v13  ;;  %664 = vmatpush3.bf16.msra.mxu1 %v678_v13 }
  0x18   :  { %599 = vmatprep.subr.bf16.mxu0 %v679_v14  ;;  %657 = vmatprep.subr.bf16.mxu1 %v679_v14 }
  0x1b   :  { %600 = vmatpush3.bf16.msra.mxu0 %v680_v15  ;;  %665 = vmatpush3.bf16.msra.mxu1 %v680_v15 }
  0x1c   :  { %601 = vmatprep.subr.bf16.mxu0 %v681_v16  ;;  %658 = vmatprep.subr.bf16.mxu1 %v681_v16 }
  0x1f   :  { %602 = vmatpush3.bf16.msra.mxu0 %v682_v17  ;;  %666 = vmatpush3.bf16.msra.mxu1 %v682_v17 }
  0x22   :  { %279 = vmatmul.mubr.bf16.vlgmr.msra.gmra.mxu0 %v683_v18  ;;  %311 = vmatmul.mubr.bf16.vlgmr.msra.gmra.mxu1 %v686_v19 }
  0x23   :  { %286 = vmatprep.mubr.bf16.mxu0 %v689_v20  ;;  %318 = vmatprep.mubr.bf16.mxu1 %v691_v21 }
  0x2a   :  { %287 = vmatmul.mubr.bf16.gmra.mxu0 %v693_v22  ;;  %319 = vmatmul.mubr.bf16.gmra.mxu1 %v694_v23 }
  0x2b   :  { %294 = vmatprep.mubr.bf16.mxu0 %v695_v24  ;;  %326 = vmatprep.mubr.bf16.mxu1 %v697_v25 }
  0x32   :  { %295 = vmatmul.mubr.bf16.gmra.mxu0 %v699_v26  ;;  %327 = vmatmul.mubr.bf16.gmra.mxu1 %v700_v27 }
  0x33   :  { %302 = vmatprep.mubr.bf16.mxu0 %v701_v28  ;;  %334 = vmatprep.mubr.bf16.mxu1 %v703_v29 }
  0x3a   :  { %303 = vmatmul.mubr.bf16.gmra.mxu0 %v705_v30  ;;  %335 = vmatmul.mubr.bf16.gmra.mxu1 %v706_v31 }
  0xe2   :  { %v603_v32 = vpop.f32.mrf.mxu0  ;;  %v627_v33 = vpop.f32.mrf.mxu1 }
  0xe4   :  { %v604_v35 = vpop.f32.mrf.mxu0  ;;  %v628_v36 = vpop.f32.mrf.mxu1 }
  0xe5   :  { %v605_v37 = vadd.f32 %v604_v35, %v603_v32  ;;  %v629_v38 = vadd.f32 %v628_v36, %v627_v33 }
  0xe6   :  { %v606_v39 = vpop.f32.mrf.mxu0  ;;  %v630_v40 = vpop.f32.mrf.mxu1 }
  0xe7   :  { %v281_v41 = vadd.f32 %v605_v37, %v826_v34  ;;  %v313_v42 = vadd.f32 %v629_v38, %v826_v34 }
  0xe8   :  { %v607_v43 = vpop.f32.mrf.mxu0  ;;  %v631_v44 = vpop.f32.mrf.mxu1 }
  0xe9   :  { %v608_v45 = vadd.f32 %v607_v43, %v606_v39  ;;  %v632_v46 = vadd.f32 %v631_v44, %v630_v40  ;;  %v359_v49 = vmul.f32 0.2, %v281_v41  ;;  %v367_v50 = vmul.f32 0.2, %v313_v42 }
  0xea   :  { %v609_v47 = vpop.f32.mrf.mxu0  ;;  %v633_v48 = vpop.f32.mrf.mxu1  ;;  %vm343_vm0 = vcmp.gt.f32.partialorder %v281_v41, 0.0  ;;  %vm351_vm1 = vcmp.gt.f32.partialorder %v313_v42, 0.0 }
  0xeb   :  { %v284_v51 = vadd.f32 %v608_v45, %v826_v34  ;;  %v316_v52 = vadd.f32 %v632_v46, %v826_v34  ;;  %v375_v61 = vsel %vm343_vm0, %v281_v41, %v359_v49  ;;  %v383_v62 = vsel %vm351_vm1, %v313_v42, %v367_v50 }
  0xec   :  { %v610_v53 = vpop.f32.mrf.mxu0  ;;  %v634_v54 = vpop.f32.mrf.mxu1 }
  0xed   :  { %v611_v55 = vadd.f32 %v610_v53, %v609_v47  ;;  %v635_v56 = vadd.f32 %v634_v54, %v633_v48  ;;  %vm344_vm2 = vcmp.gt.f32.partialorder %v284_v51, 0.0  ;;  %v360_v57 = vmul.f32 0.2, %v284_v51 }
  0xee   :  { %vm352_vm3 = vcmp.gt.f32.partialorder %v316_v52, 0.0  ;;  %v368_v58 = vmul.f32 0.2, %v316_v52  ;;  %v612_v59 = vpop.f32.mrf.mxu0  ;;  %v636_v60 = vpop.f32.mrf.mxu1 }
  0xef   :  { %v376_v63 = vsel %vm344_vm2, %v284_v51, %v360_v57  ;;  %v289_v1 = vadd.f32 %v611_v55, %v826_v34  ;;  %v321_v2 = vadd.f32 %v635_v56, %v826_v34 }
  0xf0   :  { %v384_v0 = vsel %vm352_vm3, %v316_v52, %v368_v58  ;;  %v613_v3 = vpop.f32.mrf.mxu0  ;;  %v637_v4 = vpop.f32.mrf.mxu1  ;;  %v543_v5 = vpack.c.bf16 %v376_v63, %v375_v61 }
  0xf1   :  { %v563_v6 = vpack.c.bf16 %v384_v0, %v383_v62  ;;  %v614_v7 = vadd.f32 %v613_v3, %v612_v59  ;;  %v638_v8 = vadd.f32 %v637_v4, %v636_v60  ;;  %v361_v11 = vmul.f32 0.2, %v289_v1 }
  0xf2   :  { %v615_v9 = vpop.f32.mrf.mxu0  ;;  %v639_v10 = vpop.f32.mrf.mxu1  ;;  %544 = vst [vmem:[%s871_s3] sm:$0xff] %v543_v5   ;;  %v369_v12 = vmul.f32 0.2, %v321_v2  ;;  %vm345_vm4 = vcmp.gt.f32.partialorder %v289_v1, 0.0  ;;  %vm353_vm5 = vcmp.gt.f32.partialorder %v321_v2, 0.0 }
  0xf3   :  { %583 = vst [vmem:[%s871_s3 + $0x20] sm:$0xff] %v563_v6   ;;  %v292_v13 = vadd.f32 %v614_v7, %v826_v34  ;;  %v324_v14 = vadd.f32 %v638_v8, %v826_v34  ;;  %v377_v25 = vsel %vm345_vm4, %v289_v1, %v361_v11 }
  0xf4   :  { %v616_v15 = vpop.f32.mrf.mxu0  ;;  %v640_v16 = vpop.f32.mrf.mxu1  ;;  %v385_v26 = vsel %vm353_vm5, %v321_v2, %v369_v12 }
  0xf5   :  { %v617_v17 = vadd.f32 %v616_v15, %v615_v9  ;;  %v641_v18 = vadd.f32 %v640_v16, %v639_v10  ;;  %vm346_vm6 = vcmp.gt.f32.partialorder %v292_v13, 0.0  ;;  %v362_v19 = vmul.f32 0.2, %v292_v13 }
  0xf6   :  { %vm354_vm7 = vcmp.gt.f32.partialorder %v324_v14, 0.0  ;;  %v370_v20 = vmul.f32 0.2, %v324_v14  ;;  %v618_v21 = vpop.f32.mrf.mxu0  ;;  %v642_v22 = vpop.f32.mrf.mxu1 }
  0xf7   :  { %v297_v23 = vadd.f32 %v617_v17, %v826_v34  ;;  %v329_v24 = vadd.f32 %v641_v18, %v826_v34  ;;  %v378_v27 = vsel %vm346_vm6, %v292_v13, %v362_v19 }
  0xf8   :  { %v386_v28 = vsel %vm354_vm7, %v324_v14, %v370_v20  ;;  %v619_v29 = vpop.f32.mrf.mxu0  ;;  %v643_v30 = vpop.f32.mrf.mxu1  ;;  %v548_v31 = vpack.c.bf16 %v378_v27, %v377_v25 }
  0xf9   :  { %v568_v32 = vpack.c.bf16 %v386_v28, %v385_v26  ;;  %v620_v33 = vadd.f32 %v619_v29, %v618_v21  ;;  %v644_v35 = vadd.f32 %v643_v30, %v642_v22  ;;  %v363_v38 = vmul.f32 0.2, %v297_v23 }
  0xfa   :  { %v621_v36 = vpop.f32.mrf.mxu0  ;;  %v645_v37 = vpop.f32.mrf.mxu1  ;;  %580 = vst [vmem:[%s871_s3 + $0x8] sm:$0xff] %v548_v31   ;;  %v371_v39 = vmul.f32 0.2, %v329_v24  ;;  %vm347_vm8 = vcmp.gt.f32.partialorder %v297_v23, 0.0  ;;  %vm355_vm9 = vcmp.gt.f32.partialorder %v329_v24, 0.0 }
  0xfb   :  { %584 = vst [vmem:[%s871_s3 + $0x28] sm:$0xff] %v568_v32   ;;  %v300_v40 = vadd.f32 %v620_v33, %v826_v34  ;;  %v332_v41 = vadd.f32 %v644_v35, %v826_v34  ;;  %v379_v50 = vsel %vm347_vm8, %v297_v23, %v363_v38 }
  0xfc   :  { %v622_v42 = vpop.f32.mrf.mxu0  ;;  %v646_v43 = vpop.f32.mrf.mxu1  ;;  %v387_v51 = vsel %vm355_vm9, %v329_v24, %v371_v39 }
  0xfd   :  { %v623_v44 = vadd.f32 %v622_v42, %v621_v36  ;;  %v647_v45 = vadd.f32 %v646_v43, %v645_v37  ;;  %vm348_vm10 = vcmp.gt.f32.partialorder %v300_v40, 0.0  ;;  %v364_v46 = vmul.f32 0.2, %v300_v40 }
  0xfe   :  { %vm356_vm11 = vcmp.gt.f32.partialorder %v332_v41, 0.0  ;;  %v372_v47 = vmul.f32 0.2, %v332_v41  ;;  %v624_v48 = vpop.f32.mrf.mxu0  ;;  %v648_v49 = vpop.f32.mrf.mxu1 }
  0xff   :  { %v380_v52 = vsel %vm348_vm10, %v300_v40, %v364_v46  ;;  %v305_v54 = vadd.f32 %v623_v44, %v826_v34  ;;  %v337_v55 = vadd.f32 %v647_v45, %v826_v34 }
 0x100   :  { %v388_v53 = vsel %vm356_vm11, %v332_v41, %v372_v47  ;;  %v625_v56 = vpop.f32.mrf.mxu0  ;;  %v649_v57 = vpop.f32.mrf.mxu1  ;;  %v553_v58 = vpack.c.bf16 %v380_v52, %v379_v50 }
 0x101   :  { %v573_v59 = vpack.c.bf16 %v388_v53, %v387_v51  ;;  %v626_v60 = vadd.f32 %v625_v56, %v624_v48  ;;  %v650_v61 = vadd.f32 %v649_v57, %v648_v49  ;;  %v365_v62 = vmul.f32 0.2, %v305_v54 }
 0x102   :  { %581 = vst [vmem:[%s871_s3 + $0x10] sm:$0xff] %v553_v58   ;;  %v373_v63 = vmul.f32 0.2, %v337_v55  ;;  %vm349_vm12 = vcmp.gt.f32.partialorder %v305_v54, 0.0  ;;  %vm357_vm13 = vcmp.gt.f32.partialorder %v337_v55, 0.0 }
 0x103   :  { %585 = vst [vmem:[%s871_s3 + $0x30] sm:$0xff] %v573_v59   ;;  %v308_v0 = vadd.f32 %v626_v60, %v826_v34  ;;  %v340_v1 = vadd.f32 %v650_v61, %v826_v34  ;;  %v381_v4 = vsel %vm349_vm12, %v305_v54, %v365_v62 }
 0x104   :  { %v389_v5 = vsel %vm357_vm13, %v337_v55, %v373_v63 }
 0x105   :  { %vm350_vm14 = vcmp.gt.f32.partialorder %v308_v0, 0.0  ;;  %v366_v2 = vmul.f32 0.2, %v308_v0  ;;  %vm358_vm15 = vcmp.gt.f32.partialorder %v340_v1, 0.0  ;;  %v374_v3 = vmul.f32 0.2, %v340_v1 }
 0x107   :  { %v382_v6 = vsel %vm350_vm14, %v308_v0, %v366_v2  ;;  %v390_v7 = vsel %vm358_vm15, %v340_v1, %v374_v3 }
 0x108   :  { %v558_v8 = vpack.c.bf16 %v382_v6, %v381_v4  ;;  %v578_v9 = vpack.c.bf16 %v390_v7, %v389_v5 }
 0x10a   :  { %582 = vst [vmem:[%s871_s3 + $0x18] sm:$0xff] %v558_v8   ;;  %586 = vst [vmem:[%s871_s3 + $0x38] sm:$0xff] %v578_v9  }

// kernel: _lambda_.8
= control target key start
LH: loop header
LB: loop body
LE: loop exit
PB: predicated region body
PF: predicated region fallthrough
CT: control target
= control target key end

     0   :  { %s769_s1 = inlined_call_operand.vmem [shape: bf16[512,128], index: 1, kind: input, shape index: {}]   ;;  %s770_s0 = inlined_call_operand.vmem [shape: bf16[32,512], index: 0, kind: input, shape index: {}]   ;;  %s771_s2 = inlined_call_operand.vmem [shape: f32[1,128], index: 2, kind: input, shape index: {}]   ;;  %s772_s3 = inlined_call_operand.vmem [shape: bf16[32,128], index: 3, kind: output, shape index: {}]  }
   0x1   :  { %v576_v0 = vld [vmem:[%s769_s1 + $0x78] sm:$0xff]   ;;  %v580_v4 = vld [vmem:[%s769_s1 + $0x70] sm:$0xff]   ;;  %v584_v8 = vld [vmem:[%s769_s1 + $0x68] sm:$0xff]  }
   0x2   :  { %v577_v1 = vld [vmem:[%s769_s1 + $0xf8] sm:$0xff]   ;;  %520 = vmatprep.subr.bf16.mxu0 %v576_v0  ;;  %v581_v5 = vld [vmem:[%s769_s1 + $0xf0] sm:$0xff]   ;;  %v585_v9 = vld [vmem:[%s769_s1 + $0xe8] sm:$0xff]  }
   0x3   :  { %v578_v2 = vld [vmem:[%s769_s1 + $0x38] sm:$0xff]   ;;  %548 = vmatprep.subr.bf16.mxu1 %v577_v1  ;;  %v582_v6 = vld [vmem:[%s769_s1 + $0x30] sm:$0xff]   ;;  %v586_v10 = vld [vmem:[%s769_s1 + $0x28] sm:$0xff]  }
   0x4   :  { %v579_v3 = vld [vmem:[%s769_s1 + $0xb8] sm:$0xff]   ;;  %521 = vmatpush3.bf16.msra.mxu0 %v578_v2  ;;  %v583_v7 = vld [vmem:[%s769_s1 + $0xb0] sm:$0xff]   ;;  %v587_v11 = vld [vmem:[%s769_s1 + $0xa8] sm:$0xff]  }
   0x5   :  { %549 = vmatpush3.bf16.msra.mxu1 %v579_v3  ;;  %522 = vmatprep.subr.bf16.mxu0 %v580_v4  ;;  %v588_v12 = vld [vmem:[%s769_s1 + $0x60] sm:$0xff]   ;;  %v592_v16 = vld [vmem:[%s769_s1 + $0x58] sm:$0xff]   ;;  %v596_v20 = vld [vmem:[%s769_s1 + $0x50] sm:$0xff]  }
   0x6   :  { %550 = vmatprep.subr.bf16.mxu1 %v581_v5  ;;  %v589_v13 = vld [vmem:[%s769_s1 + $0xe0] sm:$0xff]   ;;  %v593_v17 = vld [vmem:[%s769_s1 + $0xd8] sm:$0xff]   ;;  %v597_v21 = vld [vmem:[%s769_s1 + $0xd0] sm:$0xff]  }
   0x7   :  { %v590_v14 = vld [vmem:[%s769_s1 + $0x20] sm:$0xff]   ;;  %v594_v18 = vld [vmem:[%s769_s1 + $0x18] sm:$0xff]   ;;  %v598_v22 = vld [vmem:[%s769_s1 + $0x10] sm:$0xff]  }
   0x8   :  { %523 = vmatpush3.bf16.msra.mxu0 %v582_v6  ;;  %v591_v15 = vld [vmem:[%s769_s1 + $0xa0] sm:$0xff]   ;;  %v595_v19 = vld [vmem:[%s769_s1 + $0x98] sm:$0xff]   ;;  %v599_v23 = vld [vmem:[%s769_s1 + $0x90] sm:$0xff]  }
   0x9   :  { %551 = vmatpush3.bf16.msra.mxu1 %v583_v7  ;;  %524 = vmatprep.subr.bf16.mxu0 %v584_v8  ;;  %v600_v24 = vld [vmem:[%s769_s1 + $0x48] sm:$0xff]   ;;  %v604_v28 = vld [vmem:[%s769_s1 + $0x40] sm:$0xff]  }
   0xa   :  { %552 = vmatprep.subr.bf16.mxu1 %v585_v9  ;;  %v601_v25 = vld [vmem:[%s769_s1 + $0xc8] sm:$0xff]   ;;  %v605_v29 = vld [vmem:[%s769_s1 + $0xc0] sm:$0xff]  }
   0xb   :  { %v602_v26 = vld [vmem:[%s769_s1 + $0x8] sm:$0xff]   ;;  %v606_v30 = vld [vmem:[%s769_s1] sm:$0xff]  }
   0xc   :  { %525 = vmatpush3.bf16.msra.mxu0 %v586_v10  ;;  %v603_v27 = vld [vmem:[%s769_s1 + $0x88] sm:$0xff]   ;;  %v607_v31 = vld [vmem:[%s769_s1 + $0x80] sm:$0xff]  }
   0xd   :  { %553 = vmatpush3.bf16.msra.mxu1 %v587_v11  ;;  %526 = vmatprep.subr.bf16.mxu0 %v588_v12  ;;  %v608_v32 = vld [vmem:[%s770_s0] ss:$16 sps:$4 sm:$0xff]   ;;  %v610_v33 = vld [vmem:[%s770_s0 + $0x4] ss:$16 sps:$4 sm:$0xff]   ;;  %v611_v34 = vld [vmem:[%s770_s0 + $0x8] ss:$16 sps:$4 sm:$0xff]  }
   0xe   :  { %554 = vmatprep.subr.bf16.mxu1 %v589_v13  ;;  %v613_v35 = vld [vmem:[%s770_s0 + $0xc] ss:$16 sps:$4 sm:$0xff]   ;;  %358 = vmatprep.mubr.bf16.mxu0 %v610_v33  ;;  %v614_v36 = vld [vmem:[%s770_s0 + $0x24] ss:$16 sps:$4 sm:$0xff]   ;;  %v618_v38 = vld [vmem:[%s770_s0 + $0x20] ss:$16 sps:$4 sm:$0xff]  }
   0xf   :  { %407 = vmatprep.mubr.bf16.mxu1 %v613_v35  ;;  %v616_v37 = vld [vmem:[%s770_s0 + $0x2c] ss:$16 sps:$4 sm:$0xff]   ;;  %v619_v39 = vld [vmem:[%s770_s0 + $0x28] ss:$16 sps:$4 sm:$0xff]   ;;  %v460_v42 = vld [vmem:[%s771_s2] ss:$0 sm:$0xff] }
  0x10   :  { %527 = vmatpush3.bf16.msra.mxu0 %v590_v14 }
  0x11   :  { %555 = vmatpush3.bf16.msra.mxu1 %v591_v15  ;;  %528 = vmatprep.subr.bf16.mxu0 %v592_v16 }
  0x12   :  { %556 = vmatprep.subr.bf16.mxu1 %v593_v17 }
  0x14   :  { %529 = vmatpush3.bf16.msra.mxu0 %v594_v18 }
  0x15   :  { %557 = vmatpush3.bf16.msra.mxu1 %v595_v19  ;;  %530 = vmatprep.subr.bf16.mxu0 %v596_v20 }
  0x16   :  { %558 = vmatprep.subr.bf16.mxu1 %v597_v21 }
  0x18   :  { %531 = vmatpush3.bf16.msra.mxu0 %v598_v22 }
  0x19   :  { %559 = vmatpush3.bf16.msra.mxu1 %v599_v23  ;;  %532 = vmatprep.subr.bf16.mxu0 %v600_v24 }
  0x1a   :  { %560 = vmatprep.subr.bf16.mxu1 %v601_v25 }
  0x1c   :  { %533 = vmatpush3.bf16.msra.mxu0 %v602_v26 }
  0x1d   :  { %561 = vmatpush3.bf16.msra.mxu1 %v603_v27  ;;  %534 = vmatprep.subr.bf16.mxu0 %v604_v28 }
  0x1e   :  { %562 = vmatprep.subr.bf16.mxu1 %v605_v29 }
  0x20   :  { %535 = vmatpush3.bf16.msra.mxu0 %v606_v30 }
  0x21   :  { %563 = vmatpush3.bf16.msra.mxu1 %v607_v31 }
  0x23   :  { %359 = vmatmul.mubr.bf16.vlgmr.msra.gmra.mxu0 %v608_v32 }
  0x24   :  { %408 = vmatmul.mubr.bf16.vlgmr.msra.gmra.mxu1 %v611_v34  ;;  %366 = vmatprep.mubr.bf16.mxu0 %v614_v36 }
  0x25   :  { %415 = vmatprep.mubr.bf16.mxu1 %v616_v37 }
  0x2b   :  { %367 = vmatmul.mubr.bf16.gmra.mxu0 %v618_v38 }
  0x2c   :  { %416 = vmatmul.mubr.bf16.gmra.mxu1 %v619_v39 }
  0xe3   :  { %v536_v40 = vpop.f32.mrf.mxu0 }
  0xe4   :  { %v564_v41 = vpop.f32.mrf.mxu1 }
  0xe5   :  { %v537_v43 = vpop.f32.mrf.mxu0 }
  0xe6   :  { %v538_v44 = vadd.f32 %v537_v43, %v536_v40  ;;  %v565_v45 = vpop.f32.mrf.mxu1 }
  0xe7   :  { %v539_v46 = vpop.f32.mrf.mxu0  ;;  %v566_v48 = vadd.f32 %v565_v45, %v564_v41 }
  0xe8   :  { %v361_v47 = vadd.f32 %v538_v44, %v460_v42  ;;  %v567_v49 = vpop.f32.mrf.mxu1 }
  0xe9   :  { %v540_v50 = vpop.f32.mrf.mxu0 }
  0xea   :  { %v410_v51 = vadd.f32 %v566_v48, %v361_v47  ;;  %v541_v52 = vadd.f32 %v540_v50, %v539_v46  ;;  %v568_v53 = vpop.f32.mrf.mxu1 }
  0xeb   :  { %v542_v54 = vpop.f32.mrf.mxu0  ;;  %v569_v56 = vadd.f32 %v568_v53, %v567_v49 }
  0xec   :  { %v364_v55 = vadd.f32 %v541_v52, %v460_v42  ;;  %v570_v57 = vpop.f32.mrf.mxu1  ;;  %v428_v59 = vmul.f32 0.2, %v410_v51  ;;  %vm424_vm0 = vcmp.gt.f32.partialorder %v410_v51, 0.0 }
  0xed   :  { %v543_v58 = vpop.f32.mrf.mxu0 }
  0xee   :  { %v413_v60 = vadd.f32 %v569_v56, %v364_v55  ;;  %v544_v61 = vadd.f32 %v543_v58, %v542_v54  ;;  %v571_v62 = vpop.f32.mrf.mxu1  ;;  %v432_v5 = vsel %vm424_vm0, %v410_v51, %v428_v59 }
  0xef   :  { %v545_v63 = vpop.f32.mrf.mxu0  ;;  %v572_v2 = vadd.f32 %v571_v62, %v570_v57 }
  0xf0   :  { %vm425_vm1 = vcmp.gt.f32.partialorder %v413_v60, 0.0  ;;  %v429_v0 = vmul.f32 0.2, %v413_v60  ;;  %v369_v1 = vadd.f32 %v544_v61, %v460_v42  ;;  %v573_v3 = vpop.f32.mrf.mxu1 }
  0xf1   :  { %v546_v4 = vpop.f32.mrf.mxu0 }
  0xf2   :  { %v433_v6 = vsel %vm425_vm1, %v413_v60, %v429_v0  ;;  %v418_v7 = vadd.f32 %v572_v2, %v369_v1  ;;  %v547_v8 = vadd.f32 %v546_v4, %v545_v63  ;;  %v574_v9 = vpop.f32.mrf.mxu1 }
  0xf3   :  { %v512_v10 = vpack.c.bf16 %v433_v6, %v432_v5  ;;  %v575_v12 = vadd.f32 %v574_v9, %v573_v3 }
  0xf4   :  { %v372_v11 = vadd.f32 %v547_v8, %v460_v42  ;;  %v430_v13 = vmul.f32 0.2, %v418_v7  ;;  %vm426_vm2 = vcmp.gt.f32.partialorder %v418_v7, 0.0 }
  0xf5   :  { %513 = vst [vmem:[%s772_s3] sm:$0xff] %v512_v10  }
  0xf6   :  { %v421_v14 = vadd.f32 %v575_v12, %v372_v11  ;;  %v434_v16 = vsel %vm426_vm2, %v418_v7, %v430_v13 }
  0xf8   :  { %vm427_vm3 = vcmp.gt.f32.partialorder %v421_v14, 0.0  ;;  %v431_v15 = vmul.f32 0.2, %v421_v14 }
  0xfa   :  { %v435_v17 = vsel %vm427_vm3, %v421_v14, %v431_v15 }
  0xfb   :  { %v517_v18 = vpack.c.bf16 %v435_v17, %v434_v16 }
  0xfd   :  { %519 = vst [vmem:[%s772_s3 + $0x8] sm:$0xff] %v517_v18  }

// kernel: _lambda_.9
= control target key start
LH: loop header
LB: loop body
LE: loop exit
PB: predicated region body
PF: predicated region fallthrough
CT: control target
= control target key end

     0   :  { %s1240_s1 = inlined_call_operand.vmem [shape: bf16[1024,128], index: 1, kind: input, shape index: {}]   ;;  %s1241_s0 = inlined_call_operand.vmem [shape: bf16[16,1024], index: 0, kind: input, shape index: {}]   ;;  %s1242_s2 = inlined_call_operand.vmem [shape: f32[1,128], index: 2, kind: input, shape index: {}]   ;;  %s1243_s3 = inlined_call_operand.vmem [shape: f32[16,128], index: 3, kind: output, shape index: {}]  }
   0x1   :  { %v923_v0 = vld [vmem:[%s1240_s1 + $0x78] sm:$0xff]   ;;  %v927_v4 = vld [vmem:[%s1240_s1 + $0x70] sm:$0xff]   ;;  %v931_v8 = vld [vmem:[%s1240_s1 + $0x68] sm:$0xff]  }
   0x2   :  { %v924_v1 = vld [vmem:[%s1240_s1 + $0xf8] sm:$0xff]   ;;  %835 = vmatprep.subr.bf16.mxu0 %v923_v0  ;;  %v928_v5 = vld [vmem:[%s1240_s1 + $0xf0] sm:$0xff]   ;;  %v932_v9 = vld [vmem:[%s1240_s1 + $0xe8] sm:$0xff]  }
   0x3   :  { %v925_v2 = vld [vmem:[%s1240_s1 + $0x38] sm:$0xff]   ;;  %857 = vmatprep.subr.bf16.mxu1 %v924_v1  ;;  %v929_v6 = vld [vmem:[%s1240_s1 + $0x30] sm:$0xff]   ;;  %v933_v10 = vld [vmem:[%s1240_s1 + $0x28] sm:$0xff]  }
   0x4   :  { %v926_v3 = vld [vmem:[%s1240_s1 + $0xb8] sm:$0xff]   ;;  %836 = vmatpush3.bf16.msra.mxu0 %v925_v2  ;;  %v930_v7 = vld [vmem:[%s1240_s1 + $0xb0] sm:$0xff]   ;;  %v934_v11 = vld [vmem:[%s1240_s1 + $0xa8] sm:$0xff]  }
   0x5   :  { %858 = vmatpush3.bf16.msra.mxu1 %v926_v3  ;;  %837 = vmatprep.subr.bf16.mxu0 %v927_v4  ;;  %v935_v12 = vld [vmem:[%s1240_s1 + $0x60] sm:$0xff]   ;;  %v939_v16 = vld [vmem:[%s1240_s1 + $0x58] sm:$0xff]   ;;  %v943_v20 = vld [vmem:[%s1240_s1 + $0x50] sm:$0xff]  }
   0x6   :  { %859 = vmatprep.subr.bf16.mxu1 %v928_v5  ;;  %v936_v13 = vld [vmem:[%s1240_s1 + $0xe0] sm:$0xff]   ;;  %v940_v17 = vld [vmem:[%s1240_s1 + $0xd8] sm:$0xff]   ;;  %v944_v21 = vld [vmem:[%s1240_s1 + $0xd0] sm:$0xff]  }
   0x7   :  { %v937_v14 = vld [vmem:[%s1240_s1 + $0x20] sm:$0xff]   ;;  %v941_v18 = vld [vmem:[%s1240_s1 + $0x18] sm:$0xff]   ;;  %v945_v22 = vld [vmem:[%s1240_s1 + $0x10] sm:$0xff]  }
   0x8   :  { %838 = vmatpush3.bf16.msra.mxu0 %v929_v6  ;;  %v938_v15 = vld [vmem:[%s1240_s1 + $0xa0] sm:$0xff]   ;;  %v942_v19 = vld [vmem:[%s1240_s1 + $0x98] sm:$0xff]   ;;  %v946_v23 = vld [vmem:[%s1240_s1 + $0x90] sm:$0xff]  }
   0x9   :  { %860 = vmatpush3.bf16.msra.mxu1 %v930_v7  ;;  %839 = vmatprep.subr.bf16.mxu0 %v931_v8  ;;  %v947_v24 = vld [vmem:[%s1240_s1 + $0x48] sm:$0xff]   ;;  %v951_v28 = vld [vmem:[%s1240_s1 + $0x40] sm:$0xff]   ;;  %v955_v40 = vld [vmem:[%s1240_s1 + $0x178] sm:$0xff]  }
   0xa   :  { %861 = vmatprep.subr.bf16.mxu1 %v932_v9  ;;  %v948_v25 = vld [vmem:[%s1240_s1 + $0xc8] sm:$0xff]   ;;  %v952_v29 = vld [vmem:[%s1240_s1 + $0xc0] sm:$0xff]   ;;  %v956_v41 = vld [vmem:[%s1240_s1 + $0x1f8] sm:$0xff]  }
   0xb   :  { %v949_v26 = vld [vmem:[%s1240_s1 + $0x8] sm:$0xff]   ;;  %v953_v30 = vld [vmem:[%s1240_s1] sm:$0xff]   ;;  %v957_v42 = vld [vmem:[%s1240_s1 + $0x138] sm:$0xff]  }
   0xc   :  { %840 = vmatpush3.bf16.msra.mxu0 %v933_v10  ;;  %v950_v27 = vld [vmem:[%s1240_s1 + $0x88] sm:$0xff]   ;;  %v954_v31 = vld [vmem:[%s1240_s1 + $0x80] sm:$0xff]   ;;  %v958_v43 = vld [vmem:[%s1240_s1 + $0x1b8] sm:$0xff]  }
   0xd   :  { %862 = vmatpush3.bf16.msra.mxu1 %v934_v11  ;;  %841 = vmatprep.subr.bf16.mxu0 %v935_v12  ;;  %v15_v32 = vld [vmem:[%s1241_s0] sm:$0xff]  ;;  %v16_v34 = vld [vmem:[%s1241_s0 + $0x8] sm:$0xff]  ;;  %v959_v44 = vld [vmem:[%s1240_s1 + $0x170] sm:$0xff]  }
   0xe   :  { %863 = vmatprep.subr.bf16.mxu1 %v936_v13  ;;  %v19_v33 = vld [vmem:[%s1241_s0 + $0x20] sm:$0xff]  ;;  %v20_v37 = vld [vmem:[%s1241_s0 + $0x28] sm:$0xff]  ;;  %v960_v45 = vld [vmem:[%s1240_s1 + $0x1f0] sm:$0xff]  }
   0xf   :  { %v763_v35 = vcombine.low %v15_v32, %v19_v33  ;;  %v764_v36 = vcombine.high %v15_v32, %v19_v33  ;;  %v765_v38 = vcombine.low %v16_v34, %v20_v37  ;;  %v766_v39 = vcombine.high %v16_v34, %v20_v37  ;;  %v961_v46 = vld [vmem:[%s1240_s1 + $0x130] sm:$0xff]   ;;  %v963_v48 = vld [vmem:[%s1240_s1 + $0x168] sm:$0xff]   ;;  %v967_v52 = vld [vmem:[%s1240_s1 + $0x160] sm:$0xff]  }
  0x10   :  { %842 = vmatpush3.bf16.msra.mxu0 %v937_v14  ;;  %v962_v47 = vld [vmem:[%s1240_s1 + $0x1b0] sm:$0xff]   ;;  %v964_v49 = vld [vmem:[%s1240_s1 + $0x1e8] sm:$0xff]   ;;  %v968_v53 = vld [vmem:[%s1240_s1 + $0x1e0] sm:$0xff]  }
  0x11   :  { %864 = vmatpush3.bf16.msra.mxu1 %v938_v15  ;;  %843 = vmatprep.subr.bf16.mxu0 %v939_v16  ;;  %v965_v50 = vld [vmem:[%s1240_s1 + $0x128] sm:$0xff]   ;;  %v969_v54 = vld [vmem:[%s1240_s1 + $0x120] sm:$0xff]   ;;  %v971_v56 = vld [vmem:[%s1240_s1 + $0x158] sm:$0xff]  }
  0x12   :  { %865 = vmatprep.subr.bf16.mxu1 %v940_v17  ;;  %614 = vmatprep.mubr.bf16.mxu0 %v764_v36  ;;  %v966_v51 = vld [vmem:[%s1240_s1 + $0x1a8] sm:$0xff]   ;;  %v970_v55 = vld [vmem:[%s1240_s1 + $0x1a0] sm:$0xff]   ;;  %v972_v57 = vld [vmem:[%s1240_s1 + $0x1d8] sm:$0xff]  }
  0x13   :  { %655 = vmatprep.mubr.bf16.mxu1 %v766_v39  ;;  %v973_v58 = vld [vmem:[%s1240_s1 + $0x118] sm:$0xff]   ;;  %v975_v60 = vld [vmem:[%s1240_s1 + $0x150] sm:$0xff]   ;;  %v979_v0 = vld [vmem:[%s1240_s1 + $0x148] sm:$0xff]  }
  0x14   :  { %844 = vmatpush3.bf16.msra.mxu0 %v941_v18  ;;  %v974_v59 = vld [vmem:[%s1240_s1 + $0x198] sm:$0xff]   ;;  %v976_v61 = vld [vmem:[%s1240_s1 + $0x1d0] sm:$0xff]   ;;  %v980_v1 = vld [vmem:[%s1240_s1 + $0x1c8] sm:$0xff]  }
  0x15   :  { %866 = vmatpush3.bf16.msra.mxu1 %v942_v19  ;;  %845 = vmatprep.subr.bf16.mxu0 %v943_v20  ;;  %v977_v62 = vld [vmem:[%s1240_s1 + $0x110] sm:$0xff]   ;;  %v981_v2 = vld [vmem:[%s1240_s1 + $0x108] sm:$0xff]   ;;  %v983_v4 = vld [vmem:[%s1240_s1 + $0x140] sm:$0xff]  }
  0x16   :  { %867 = vmatprep.subr.bf16.mxu1 %v944_v21  ;;  %v978_v63 = vld [vmem:[%s1240_s1 + $0x190] sm:$0xff]   ;;  %v982_v3 = vld [vmem:[%s1240_s1 + $0x188] sm:$0xff]   ;;  %v984_v5 = vld [vmem:[%s1240_s1 + $0x1c0] sm:$0xff]  }
  0x17   :  { %v985_v6 = vld [vmem:[%s1240_s1 + $0x100] sm:$0xff]   ;;  %v17_v8 = vld [vmem:[%s1241_s0 + $0x10] sm:$0xff]  ;;  %v18_v12 = vld [vmem:[%s1241_s0 + $0x18] sm:$0xff] }
  0x18   :  { %846 = vmatpush3.bf16.msra.mxu0 %v945_v22  ;;  %v986_v7 = vld [vmem:[%s1240_s1 + $0x180] sm:$0xff]   ;;  %v21_v9 = vld [vmem:[%s1241_s0 + $0x30] sm:$0xff]  ;;  %v22_v13 = vld [vmem:[%s1241_s0 + $0x38] sm:$0xff] }
  0x19   :  { %868 = vmatpush3.bf16.msra.mxu1 %v946_v23  ;;  %847 = vmatprep.subr.bf16.mxu0 %v947_v24  ;;  %v767_v10 = vcombine.low %v17_v8, %v21_v9  ;;  %v768_v11 = vcombine.high %v17_v8, %v21_v9  ;;  %v769_v14 = vcombine.low %v18_v12, %v22_v13  ;;  %v762_v23 = vld [vmem:[%s1242_s2] ss:$0 sm:$0xff] }
  0x1a   :  { %869 = vmatprep.subr.bf16.mxu1 %v948_v25  ;;  %v770_v15 = vcombine.high %v18_v12, %v22_v13 }
  0x1c   :  { %848 = vmatpush3.bf16.msra.mxu0 %v949_v26 }
  0x1d   :  { %870 = vmatpush3.bf16.msra.mxu1 %v950_v27  ;;  %849 = vmatprep.subr.bf16.mxu0 %v951_v28 }
  0x1e   :  { %871 = vmatprep.subr.bf16.mxu1 %v952_v29 }
  0x20   :  { %850 = vmatpush3.bf16.msra.mxu0 %v953_v30 }
  0x21   :  { %872 = vmatpush3.bf16.msra.mxu1 %v954_v31  ;;  %879 = vmatprep.subr.bf16.mxu0 %v955_v40 }
  0x22   :  { %901 = vmatprep.subr.bf16.mxu1 %v956_v41 }
  0x23   :  { %615 = vmatmul.mubr.bf16.vlgmr.msra.gmra.mxu0 %v763_v35 }
  0x24   :  { %656 = vmatmul.mubr.bf16.vlgmr.msra.gmra.mxu1 %v765_v38  ;;  %880 = vmatpush3.bf16.msra.mxu0 %v957_v42 }
  0x25   :  { %902 = vmatpush3.bf16.msra.mxu1 %v958_v43  ;;  %881 = vmatprep.subr.bf16.mxu0 %v959_v44 }
  0x26   :  { %903 = vmatprep.subr.bf16.mxu1 %v960_v45  ;;  %696 = vmatprep.mubr.bf16.mxu0 %v768_v11 }
  0x27   :  { %737 = vmatprep.mubr.bf16.mxu1 %v770_v15 }
  0x28   :  { %882 = vmatpush3.bf16.msra.mxu0 %v961_v46 }
  0x29   :  { %904 = vmatpush3.bf16.msra.mxu1 %v962_v47  ;;  %883 = vmatprep.subr.bf16.mxu0 %v963_v48 }
  0x2a   :  { %905 = vmatprep.subr.bf16.mxu1 %v964_v49 }
  0x2c   :  { %884 = vmatpush3.bf16.msra.mxu0 %v965_v50 }
  0x2d   :  { %906 = vmatpush3.bf16.msra.mxu1 %v966_v51  ;;  %885 = vmatprep.subr.bf16.mxu0 %v967_v52 }
  0x2e   :  { %907 = vmatprep.subr.bf16.mxu1 %v968_v53 }
  0x30   :  { %886 = vmatpush3.bf16.msra.mxu0 %v969_v54 }
  0x31   :  { %908 = vmatpush3.bf16.msra.mxu1 %v970_v55  ;;  %887 = vmatprep.subr.bf16.mxu0 %v971_v56 }
  0x32   :  { %909 = vmatprep.subr.bf16.mxu1 %v972_v57 }
  0x34   :  { %888 = vmatpush3.bf16.msra.mxu0 %v973_v58 }
  0x35   :  { %910 = vmatpush3.bf16.msra.mxu1 %v974_v59  ;;  %889 = vmatprep.subr.bf16.mxu0 %v975_v60 }
  0x36   :  { %911 = vmatprep.subr.bf16.mxu1 %v976_v61 }
  0x38   :  { %890 = vmatpush3.bf16.msra.mxu0 %v977_v62 }
  0x39   :  { %912 = vmatpush3.bf16.msra.mxu1 %v978_v63  ;;  %891 = vmatprep.subr.bf16.mxu0 %v979_v0 }
  0x3a   :  { %913 = vmatprep.subr.bf16.mxu1 %v980_v1 }
  0x3c   :  { %892 = vmatpush3.bf16.msra.mxu0 %v981_v2 }
  0x3d   :  { %914 = vmatpush3.bf16.msra.mxu1 %v982_v3  ;;  %893 = vmatprep.subr.bf16.mxu0 %v983_v4 }
  0x3e   :  { %915 = vmatprep.subr.bf16.mxu1 %v984_v5 }
  0x40   :  { %894 = vmatpush3.bf16.msra.mxu0 %v985_v6 }
  0x41   :  { %916 = vmatpush3.bf16.msra.mxu1 %v986_v7 }
  0x43   :  { %697 = vmatmul.mubr.bf16.vlgmr.msra.gmra.mxu0 %v767_v10 }
  0x44   :  { %738 = vmatmul.mubr.bf16.vlgmr.msra.gmra.mxu1 %v769_v14 }
  0xe3   :  { %v851_v16 = vpop.f32.mrf.mxu0 }
  0xe4   :  { %v873_v17 = vpop.f32.mrf.mxu1 }
  0xe5   :  { %v852_v18 = vpop.f32.mrf.mxu0 }
  0xe6   :  { %v874_v19 = vpop.f32.mrf.mxu1  ;;  %v853_v21 = vadd.f32 %v852_v18, %v851_v16 }
  0xe7   :  { %v854_v20 = vpop.f32.mrf.mxu0  ;;  %v875_v26 = vadd.f32 %v874_v19, %v873_v17 }
  0xe8   :  { %v876_v22 = vpop.f32.mrf.mxu1  ;;  %v617_v25 = vadd.f32 %v853_v21, %v762_v23 }
  0xe9   :  { %v855_v24 = vpop.f32.mrf.mxu0 }
  0xea   :  { %v856_v27 = vadd.f32 %v855_v24, %v854_v20  ;;  %v877_v28 = vpop.f32.mrf.mxu1  ;;  %v658_v32 = vadd.f32 %v875_v26, %v617_v25 }
  0xeb   :  { %v878_v37 = vadd.f32 %v877_v28, %v876_v22 }
  0xec   :  { %v620_v33 = vadd.f32 %v856_v27, %v762_v23 }
  0xee   :  { %v661_v42 = vadd.f32 %v878_v37, %v620_v33 }
 0x103   :  { %v895_v29 = vpop.f32.mrf.mxu0 }
 0x104   :  { %v917_v30 = vpop.f32.mrf.mxu1 }
 0x105   :  { %v896_v31 = vpop.f32.mrf.mxu0 }
 0x106   :  { %v897_v34 = vadd.f32 %v896_v31, %v895_v29  ;;  %v918_v35 = vpop.f32.mrf.mxu1 }
 0x107   :  { %v898_v36 = vpop.f32.mrf.mxu0  ;;  %v919_v39 = vadd.f32 %v918_v35, %v917_v30 }
 0x108   :  { %v699_v38 = vadd.f32 %v897_v34, %v658_v32  ;;  %v920_v40 = vpop.f32.mrf.mxu1 }
 0x109   :  { %v899_v41 = vpop.f32.mrf.mxu0 }
 0x10a   :  { %v740_v43 = vadd.f32 %v919_v39, %v699_v38  ;;  %v900_v44 = vadd.f32 %v899_v41, %v898_v36  ;;  %v921_v45 = vpop.f32.mrf.mxu1 }
 0x10b   :  { %v922_v48 = vadd.f32 %v921_v45, %v920_v40 }
 0x10c   :  { %v746_v46 = vsub.f32 0.0, %v740_v43  ;;  %v702_v47 = vadd.f32 %v900_v44, %v661_v42 }
 0x10e   :  { %v748_v49 = vmul.f32 1.442695, %v746_v46  ;;  %v743_v50 = vadd.f32 %v922_v48, %v702_v47 }
 0x110   :  { %987 = vpow2.f32 %v748_v49  ;;  %v747_v51 = vsub.f32 0.0, %v743_v50 }
 0x112   :  { %v750_v52 = vmul.f32 1.442695, %v747_v51 }
 0x114   :  { %989 = vpow2.f32 %v750_v52 }
 0x11d   :  { %v988_v53 = vpop.eup %987 }
 0x11e   :  { %v752_v54 = vadd.f32 1.0, %v988_v53 }
 0x120   :  { %991 = vrcp.f32 %v752_v54 }
 0x121   :  { %v990_v55 = vpop.eup %989 }
 0x122   :  { %v753_v56 = vadd.f32 1.0, %v990_v55 }
 0x124   :  { %993 = vrcp.f32 %v753_v56 }
 0x12d   :  { %v992_v57 = vpop.eup %991 }
 0x12e   :  { %756 = vst [vmem:[%s1243_s3] sm:$0xff] %v992_v57 }
 0x131   :  { %v994_v58 = vpop.eup %993 }
 0x132   :  { %757 = vst [vmem:[%s1243_s3 + $0x8] sm:$0xff] %v994_v58 }

</bundles_post_ra>
